<compile_context>
chip_gen: v6e
topology: v6e:2x2x1
jax: 0.10.0
libtpu: 0.0.40
codegen_flags: <defaults>
</compile_context>

<pallas_src>
import math
import numpy as np
import jax
import jax.numpy as jnp
from jax.experimental import pallas as pl
from jax.experimental.pallas import tpu as pltpu


# ---------------------------------------------------------------------------
# Fused kernel: conv1(1->32,k5,p2) -> conv2(32->64,k7,p3,s2) -> conv3(64->128,k9,p4,s2)
#               -> conv4(128->1,k1) -> x4 linear upsample (align_corners=False)
# Per grid step (b, t) it produces output phases for y3/z rows [t*T3, t*T3+T3).
# Local coordinate frames (beta = t*T3):
#   z/y3 rows   v' in [0, T3+2)   <-> global i3 = beta - 1 + v'   (+-1 halo for interp)
#   y2 (mod-2)  u2 in [0, T3+6)   <-> global i2 = 2*beta - 6 + 2*u2 + p
#   y1 (mod-4)  s4 in [0, T3+8)   <-> global i1 = 4*beta - 16 + 4*s4 + q
#   x  (mod-4)  r4 in [0, T3+10)  <-> global ix = 4*beta - 20 + 4*r4 + m
# ---------------------------------------------------------------------------
def _make_fused_kernel(T3, L3):
    V = T3 + 2      # z / y3 rows (with +-1 interp halo)
    U2 = T3 + 6     # y2 phase-pair rows
    S4 = T3 + 8     # y1 phase-quad rows
    RX = T3 + 10    # x  phase-quad rows
    K1, K2, K3 = 5, 7, 9
    C1 = 32

    def kernel(x_ref, w1_ref, s1_ref, h1_ref, w2_ref, s2_ref, h2_ref,
               w3_ref, s3_ref, h3_ref, w4_ref, b4_ref, o_ref):
        beta = pl.program_id(1) * T3

        # x window, phases on sublanes, quotient on lanes:
        #   xw[m, r4] = x[4*(beta + r4) + m - 20]   (zero outside [0, L))
        xw = x_ref[0, 0]                                        # (4, RX) f32

        # ---- layer 1: Conv1d(1->32, k=5, pad=2) + BN + ReLU (VPU, phase-split by 4) ----
        lane1 = jax.lax.broadcasted_iota(jnp.int32, (1, S4), 1)
        ok1 = jnp.logical_and(lane1 + (beta - 4) >= 0, lane1 + (beta - 4) < L3)
        y1 = []
        for q in range(4):
            acc = jnp.zeros((C1, S4), jnp.float32)
            for k in range(K1):                                  # x local r = 4*s4 + q + k + 2
                e = q + k + 2
                xs = xw[e % 4:e % 4 + 1, e // 4:e // 4 + S4]     # (1, S4)
                acc = acc + w1_ref[k] * xs                       # (32,1)*(1,S4)
            v = jnp.maximum(acc * s1_ref[...] + h1_ref[...], 0.0)
            v = jnp.where(ok1, v, 0.0)                           # zero-pad semantics for conv2
            y1.append(v.astype(jnp.bfloat16))

        # ---- layer 2: Conv1d(32->64, k=7, pad=3, stride=2) + BN + ReLU ----
        # im2col folded contraction K*Cin = 224; y1 local s = 4*u2 + 2*p + k + 1
        lane2 = jax.lax.broadcasted_iota(jnp.int32, (1, U2), 1)
        ok2 = jnp.logical_and(lane2 + (beta - 3) >= 0, lane2 + (beta - 3) < L3)
        w2 = w2_ref[...]                                         # (64, 224) bf16
        y2 = []
        for p in range(2):
            pieces = []
            for k in range(K2):
                e2 = 2 * p + k + 1
                pieces.append(y1[e2 % 4][:, e2 // 4:e2 // 4 + U2])
            b2 = jnp.concatenate(pieces, axis=0)                 # (224, U2) bf16
            acc = jnp.dot(w2, b2, preferred_element_type=jnp.float32)
            v = jnp.maximum(acc * s2_ref[...] + h2_ref[...], 0.0)
            v = jnp.where(ok2, v, 0.0)                           # zero-pad semantics for conv3
            y2.append(v.astype(jnp.bfloat16))

        # ---- layer 3: Conv1d(64->128, k=9, pad=4, stride=2) + BN + ReLU ----
        # im2col folded contraction K*Cin = 576; y2 local u = 2*v' + k
        w3 = w3_ref[...]                                         # (128, 576) bf16
        pieces = [y2[k % 2][:, k // 2:k // 2 + V] for k in range(K3)]
        b3 = jnp.concatenate(pieces, axis=0)                     # (576, V) bf16
        y3 = jnp.dot(w3, b3, preferred_element_type=jnp.float32)  # (128, V)
        y3 = jnp.maximum(y3 * s3_ref[...] + h3_ref[...], 0.0)

        # ---- layer 4: Conv1d(128->1, k=1):  z[0, v'] = z_global[beta - 1 + v'] ----
        z = jnp.dot(w4_ref[...], y3, preferred_element_type=jnp.float32) + b4_ref[...]

        # ---- x4 linear interpolation (align_corners=False), fused epilogue ----
        # out[4j+0] = 3/8 z[j-1] + 5/8 z[j]    out[4j+1] = 1/8 z[j-1] + 7/8 z[j]
        # out[4j+2] = 7/8 z[j]   + 1/8 z[j+1]  out[4j+3] = 5/8 z[j]   + 3/8 z[j+1]
        # with edge clamping of j-1 / j+1 into [0, L3).
        zc = z[:, 1:1 + T3]
        zl = z[:, 0:T3]
        zr = z[:, 2:2 + T3]
        lane3 = jax.lax.broadcasted_iota(jnp.int32, (1, T3), 1)
        j = lane3 + beta
        zl = jnp.where(j - 1 >= 0, zl, zc)
        zr = jnp.where(j + 1 <= L3 - 1, zr, zc)
        out = jnp.concatenate([
            0.375 * zl + 0.625 * zc,
            0.125 * zl + 0.875 * zc,
            0.875 * zc + 0.125 * zr,
            0.625 * zc + 0.375 * zr,
        ], axis=0)                                               # (4, T3) lane-dense
        o_ref[0] = out.astype(o_ref.dtype)

    return kernel


def peak_picker_forward(x_ncl, params, *, t3_max=512, interpret=False):
    """Equivalent of PeakPicker1D.forward: x (N, 1, L) -> (N, 1, L)."""
    N, Cin, L = x_ncl.shape
    assert Cin == 1, "TODO(synk): only in_ch=1 (module default) is supported"
    assert L % 4 == 0 and L >= 4, "TODO(synk): L % 4 == 0 required (exact x4 upsample)"
    assert t3_max % 128 == 0
    L3 = L // 4
    if L3 <= t3_max:
        T3, nT = L3, 1
    else:
        T3 = t3_max
        nT = pl.cdiv(L3, T3)
    L3p = nT * T3
    RX = T3 + 10

    # --- layout glue: zero-extend, mod-4 phase pack and cut halo'd per-tile windows ---
    x = x_ncl.reshape(N, L)
    x_ext = jnp.pad(x, ((0, 0), (20, 4 * L3p + 20 - L)))        # x_ext[p] = x[p - 20]
    x_ph = x_ext.reshape(N, L3p + 10, 4)                        # [r4, m] = x[4*r4 + m - 20]
    rows = jnp.arange(nT)[:, None] * T3 + jnp.arange(RX)[None, :]
    x_win = jnp.transpose(x_ph[:, rows, :], (0, 1, 3, 2))       # (N, nT, 4, RX)

    kernel = _make_fused_kernel(T3, L3)
    full = lambda b, t: (0, 0)
    out_pj = pl.pallas_call(
        kernel,
        out_shape=jax.ShapeDtypeStruct((N, 4, L3p), jnp.float32),
        grid=(N, nT),
        in_specs=[
            pl.BlockSpec((1, 1, 4, RX), lambda b, t: (b, t, 0, 0)),   # x window (halo'd)
            pl.BlockSpec((5, 32, 1), lambda b, t: (0, 0, 0)),         # w1 taps
            pl.BlockSpec((32, 1), full), pl.BlockSpec((32, 1), full),  # scale1 / shift1
            pl.BlockSpec((64, 224), full),                             # w2 (im2col-folded)
            pl.BlockSpec((64, 1), full), pl.BlockSpec((64, 1), full),  # scale2 / shift2
            pl.BlockSpec((128, 576), full),                            # w3 (im2col-folded)
            pl.BlockSpec((128, 1), full), pl.BlockSpec((128, 1), full),  # scale3 / shift3
            pl.BlockSpec((1, 128), full),                              # w4
            pl.BlockSpec((1, 1), full),                                # b4
        ],
        out_specs=pl.BlockSpec((1, 4, T3), lambda b, t: (b, 0, t)),    # lane-dense stores
        compiler_params=pltpu.CompilerParams(
            dimension_semantics=("parallel", "parallel"),
            vmem_limit_bytes=32 * 1024 * 1024),
        interpret=interpret,
    )(x_win,
      params["w1"], params["s1"], params["h1"],
      params["w2"], params["s2"], params["h2"],
      params["w3"], params["s3"], params["h3"],
      params["w4"], params["b4"])

    # (N, 4, L3p) phase-major -> (N, 1, L) interleaved (pure layout plumbing)
    out = jnp.transpose(out_pj, (0, 2, 1)).reshape(N, 4 * L3p)[:, :L]
    return out.reshape(N, 1, L)


# ---------------------------------------------------------------------------
# Parameters (torch-style init) + folding into the kernel's layout
# ---------------------------------------------------------------------------
_LAYERS = [
    dict(cout=32, k=5, pad=2, stride=1, bn=True),
    dict(cout=64, k=7, pad=3, stride=2, bn=True),
    dict(cout=128, k=9, pad=4, stride=2, bn=True),
    dict(cout=1, k=1, pad=0, stride=1, bn=False),
]


def init_params(key, in_ch=1):
    raw = []
    cin = in_ch
    for cfg in _LAYERS:
        cout, k = cfg["cout"], cfg["k"]
        key, kw, kb, kg, kbt = jax.random.split(key, 5)
        bound = 1.0 / math.sqrt(cin * k)
        entry = dict(
            w=jax.random.uniform(kw, (cout, cin, k), jnp.float32, -bound, bound),
            b=jax.random.uniform(kb, (cout,), jnp.float32, -bound, bound),
            stride=cfg["stride"], pad=cfg["pad"], bn=cfg["bn"])
        if cfg["bn"]:
            entry["gamma"] = jax.random.uniform(kg, (cout,), jnp.float32, 0.5, 1.5)
            entry["beta"] = jax.random.uniform(kbt, (cout,), jnp.float32, -0.1, 0.1)
        raw.append(entry)
        cin = cout
    return raw


def fold_params(raw, eps=1e-5):
    def bn_fold(e):  # inference BN, running_mean=0, running_var=1
        scale = e["gamma"] / jnp.sqrt(1.0 + eps)
        return scale, e["beta"] + e["b"] * scale

    l1, l2, l3, l4 = raw
    s1, h1 = bn_fold(l1)
    s2, h2 = bn_fold(l2)
    s3, h3 = bn_fold(l3)
    return dict(
        w1=jnp.transpose(l1["w"], (2, 0, 1)).astype(jnp.float32),                 # (5,32,1)
        s1=s1.reshape(32, 1), h1=h1.reshape(32, 1),
        w2=jnp.transpose(l2["w"], (0, 2, 1)).reshape(64, 7 * 32).astype(jnp.bfloat16),
        s2=s2.reshape(64, 1), h2=h2.reshape(64, 1),
        w3=jnp.transpose(l3["w"], (0, 2, 1)).reshape(128, 9 * 64).astype(jnp.bfloat16),
        s3=s3.reshape(128, 1), h3=h3.reshape(128, 1),
        w4=l4["w"].reshape(1, 128).astype(jnp.float32),
        b4=l4["b"].reshape(1, 1),
    )


# ---------------------------------------------------------------------------
# Pure-JAX reference (f32) for a correctness sanity check
# ---------------------------------------------------------------------------
def ref_forward(x, raw, eps=1e-5):
    h = x.astype(jnp.float32)
    for lyr in raw:
        h = jax.lax.conv_general_dilated(
            h, lyr["w"], window_strides=(lyr["stride"],),
            padding=[(lyr["pad"], lyr["pad"])],
            dimension_numbers=("NCH", "OIH", "NCH"))
        h = h + lyr["b"][None, :, None]
        if lyr["bn"]:
            scale = lyr["gamma"] / jnp.sqrt(1.0 + eps)
            h = jnp.maximum(h * scale[None, :, None] + lyr["beta"][None, :, None], 0.0)
    N, _, Lz = h.shape
    L = x.shape[-1]
    Wm = np.zeros((L, Lz), np.float32)
    s = Lz / L
    for i in range(L):                      # PyTorch align_corners=False rule
        src = max((i + 0.5) * s - 0.5, 0.0)
        i0 = int(np.floor(src))
        lam = src - i0
        i1 = min(i0 + 1, Lz - 1)
        Wm[i, i0] += 1.0 - lam
        Wm[i, i1] += lam
    return jnp.einsum("il,ncl->nci", jnp.asarray(Wm), h)


if __name__ == "__main__":
    key = jax.random.PRNGKey(0)
    kx, kp = jax.random.split(key)
    N, C, L = 2, 1, 16
    x = jax.random.normal(kx, (N, C, L), jnp.float32)
    raw = init_params(kp, in_ch=C)
    params = fold_params(raw)

    y = peak_picker_forward(x, params)
    jax.block_until_ready(y)
    assert y.shape == (N, 1, L), y.shape
    assert y.dtype == jnp.float32

    y_ref = ref_forward(x, raw)
    err = float(jnp.max(jnp.abs(y - y_ref)))
    assert err < 5e-2, f"max abs err vs reference: {err}"
    print("KERNEL_OK")
</pallas_src>

<mosaic_0001>
module attributes {stable_mosaic.version = 11 : i64} {
  func.func @kernel(%arg0: i32, %arg1: i32, %arg2: memref<1x1x4x14xf32, #tpu.memory_space<vmem>>, %arg3: memref<5x32x1xf32, #tpu.memory_space<vmem>>, %arg4: memref<32x1xf32, #tpu.memory_space<vmem>>, %arg5: memref<32x1xf32, #tpu.memory_space<vmem>>, %arg6: memref<64x224xbf16, #tpu.memory_space<vmem>>, %arg7: memref<64x1xf32, #tpu.memory_space<vmem>>, %arg8: memref<64x1xf32, #tpu.memory_space<vmem>>, %arg9: memref<128x576xbf16, #tpu.memory_space<vmem>>, %arg10: memref<128x1xf32, #tpu.memory_space<vmem>>, %arg11: memref<128x1xf32, #tpu.memory_space<vmem>>, %arg12: memref<1x128xf32, #tpu.memory_space<vmem>>, %arg13: memref<1x1xf32, #tpu.memory_space<vmem>>, %arg14: memref<1x4x4xf32, #tpu.memory_space<vmem>>) attributes {dimension_semantics = [#tpu.dimension_semantics<parallel>, #tpu.dimension_semantics<parallel>], iteration_bounds = array<i64: 2, 1>, scalar_prefetch = 0 : i64, scratch_operands = 0 : i64, tpu.core_type = #tpu.core_type<tc>, window_params = [{transform_indices = @transform_0, window_bounds = array<i64: 1, 1, 4, 14>}, {pipeline_mode = #tpu.pipeline_mode<synchronous>, transform_indices = @transform_1, window_bounds = array<i64: 5, 32, 1>}, {pipeline_mode = #tpu.pipeline_mode<synchronous>, transform_indices = @transform_2, window_bounds = array<i64: 32, 1>}, {pipeline_mode = #tpu.pipeline_mode<synchronous>, transform_indices = @transform_3, window_bounds = array<i64: 32, 1>}, {pipeline_mode = #tpu.pipeline_mode<synchronous>, transform_indices = @transform_4, window_bounds = array<i64: 64, 224>}, {pipeline_mode = #tpu.pipeline_mode<synchronous>, transform_indices = @transform_5, window_bounds = array<i64: 64, 1>}, {pipeline_mode = #tpu.pipeline_mode<synchronous>, transform_indices = @transform_6, window_bounds = array<i64: 64, 1>}, {pipeline_mode = #tpu.pipeline_mode<synchronous>, transform_indices = @transform_7, window_bounds = array<i64: 128, 576>}, {pipeline_mode = #tpu.pipeline_mode<synchronous>, transform_indices = @transform_8, window_bounds = array<i64: 128, 1>}, {pipeline_mode = #tpu.pipeline_mode<synchronous>, transform_indices = @transform_9, window_bounds = array<i64: 128, 1>}, {pipeline_mode = #tpu.pipeline_mode<synchronous>, transform_indices = @transform_10, window_bounds = array<i64: 1, 128>}, {pipeline_mode = #tpu.pipeline_mode<synchronous>, transform_indices = @transform_11, window_bounds = array<i64: 1, 1>}, {transform_indices = @transform_12, window_bounds = array<i64: 1, 4, 4>}]} {
    %c4_i32 = arith.constant 4 : i32
    %0 = arith.muli %arg1, %c4_i32 : i32
    %c0 = arith.constant 0 : index
    %c0_0 = arith.constant 0 : index
    %c0_1 = arith.constant 0 : index
    %c0_2 = arith.constant 0 : index
    %1 = vector.load %arg2[%c0, %c0_0, %c0_1, %c0_2] : memref<1x1x4x14xf32, #tpu.memory_space<vmem>>, vector<1x1x4x14xf32>
    %2 = vector.shape_cast %1 : vector<1x1x4x14xf32> to vector<4x14xf32>
    %3 = tpu.iota {dimensions = array<i32: 1>} : vector<1x12xi32>
    %c4_i32_3 = arith.constant 4 : i32
    %4 = arith.subi %0, %c4_i32_3 : i32
    %5 = vector.broadcast %4 : i32 to vector<1x12xi32>
    %6 = arith.addi %3, %5 : vector<1x12xi32>
    %c0_i32 = arith.constant 0 : i32
    %7 = vector.broadcast %c0_i32 : i32 to vector<1x12xi32>
    %8 = arith.cmpi sge, %6, %7 : vector<1x12xi32>
    %c4_i32_4 = arith.constant 4 : i32
    %9 = arith.subi %0, %c4_i32_4 : i32
    %10 = vector.broadcast %9 : i32 to vector<1x12xi32>
    %11 = arith.addi %3, %10 : vector<1x12xi32>
    %c4_i32_5 = arith.constant 4 : i32
    %12 = vector.broadcast %c4_i32_5 : i32 to vector<1x12xi32>
    %13 = arith.cmpi slt, %11, %12 : vector<1x12xi32>
    %14 = arith.andi %8, %13 : vector<1x12xi1>
    %cst = arith.constant 0.000000e+00 : f32
    %15 = vector.broadcast %cst : f32 to vector<32x12xf32>
    %16 = vector.extract_strided_slice %2 {offsets = [2, 0], sizes = [1, 12], strides = [1, 1]} : vector<4x14xf32> to vector<1x12xf32>
    %c0_6 = arith.constant 0 : index
    %c0_7 = arith.constant 0 : index
    %c0_8 = arith.constant 0 : index
    %17 = vector.load %arg3[%c0_6, %c0_7, %c0_8] : memref<5x32x1xf32, #tpu.memory_space<vmem>>, vector<1x32x1xf32>
    %18 = vector.shape_cast %17 : vector<1x32x1xf32> to vector<32x1xf32>
    %19 = vector.broadcast %18 : vector<32x1xf32> to vector<32x12xf32>
    %20 = vector.broadcast %16 : vector<1x12xf32> to vector<32x12xf32>
    %21 = arith.mulf %19, %20 : vector<32x12xf32>
    %22 = arith.addf %15, %21 : vector<32x12xf32>
    %23 = vector.extract_strided_slice %2 {offsets = [3, 0], sizes = [1, 12], strides = [1, 1]} : vector<4x14xf32> to vector<1x12xf32>
    %c1 = arith.constant 1 : index
    %c0_9 = arith.constant 0 : index
    %c0_10 = arith.constant 0 : index
    %24 = vector.load %arg3[%c1, %c0_9, %c0_10] : memref<5x32x1xf32, #tpu.memory_space<vmem>>, vector<1x32x1xf32>
    %25 = vector.shape_cast %24 : vector<1x32x1xf32> to vector<32x1xf32>
    %26 = vector.broadcast %25 : vector<32x1xf32> to vector<32x12xf32>
    %27 = vector.broadcast %23 : vector<1x12xf32> to vector<32x12xf32>
    %28 = arith.mulf %26, %27 : vector<32x12xf32>
    %29 = arith.addf %22, %28 : vector<32x12xf32>
    %30 = vector.extract_strided_slice %2 {offsets = [0, 1], sizes = [1, 12], strides = [1, 1]} : vector<4x14xf32> to vector<1x12xf32>
    %c2 = arith.constant 2 : index
    %c0_11 = arith.constant 0 : index
    %c0_12 = arith.constant 0 : index
    %31 = vector.load %arg3[%c2, %c0_11, %c0_12] : memref<5x32x1xf32, #tpu.memory_space<vmem>>, vector<1x32x1xf32>
    %32 = vector.shape_cast %31 : vector<1x32x1xf32> to vector<32x1xf32>
    %33 = vector.broadcast %32 : vector<32x1xf32> to vector<32x12xf32>
    %34 = vector.broadcast %30 : vector<1x12xf32> to vector<32x12xf32>
    %35 = arith.mulf %33, %34 : vector<32x12xf32>
    %36 = arith.addf %29, %35 : vector<32x12xf32>
    %37 = vector.extract_strided_slice %2 {offsets = [1, 1], sizes = [1, 12], strides = [1, 1]} : vector<4x14xf32> to vector<1x12xf32>
    %c3 = arith.constant 3 : index
    %c0_13 = arith.constant 0 : index
    %c0_14 = arith.constant 0 : index
    %38 = vector.load %arg3[%c3, %c0_13, %c0_14] : memref<5x32x1xf32, #tpu.memory_space<vmem>>, vector<1x32x1xf32>
    %39 = vector.shape_cast %38 : vector<1x32x1xf32> to vector<32x1xf32>
    %40 = vector.broadcast %39 : vector<32x1xf32> to vector<32x12xf32>
    %41 = vector.broadcast %37 : vector<1x12xf32> to vector<32x12xf32>
    %42 = arith.mulf %40, %41 : vector<32x12xf32>
    %43 = arith.addf %36, %42 : vector<32x12xf32>
    %44 = vector.extract_strided_slice %2 {offsets = [2, 1], sizes = [1, 12], strides = [1, 1]} : vector<4x14xf32> to vector<1x12xf32>
    %c4 = arith.constant 4 : index
    %c0_15 = arith.constant 0 : index
    %c0_16 = arith.constant 0 : index
    %45 = vector.load %arg3[%c4, %c0_15, %c0_16] : memref<5x32x1xf32, #tpu.memory_space<vmem>>, vector<1x32x1xf32>
    %46 = vector.shape_cast %45 : vector<1x32x1xf32> to vector<32x1xf32>
    %47 = vector.broadcast %46 : vector<32x1xf32> to vector<32x12xf32>
    %48 = vector.broadcast %44 : vector<1x12xf32> to vector<32x12xf32>
    %49 = arith.mulf %47, %48 : vector<32x12xf32>
    %50 = arith.addf %43, %49 : vector<32x12xf32>
    %c0_17 = arith.constant 0 : index
    %c0_18 = arith.constant 0 : index
    %51 = vector.load %arg4[%c0_17, %c0_18] : memref<32x1xf32, #tpu.memory_space<vmem>>, vector<32x1xf32>
    %52 = vector.broadcast %51 : vector<32x1xf32> to vector<32x12xf32>
    %53 = arith.mulf %50, %52 : vector<32x12xf32>
    %c0_19 = arith.constant 0 : index
    %c0_20 = arith.constant 0 : index
    %54 = vector.load %arg5[%c0_19, %c0_20] : memref<32x1xf32, #tpu.memory_space<vmem>>, vector<32x1xf32>
    %55 = vector.broadcast %54 : vector<32x1xf32> to vector<32x12xf32>
    %56 = arith.addf %53, %55 : vector<32x12xf32>
    %cst_21 = arith.constant 0.000000e+00 : f32
    %57 = vector.broadcast %cst_21 : f32 to vector<32x12xf32>
    %58 = arith.maximumf %56, %57 : vector<32x12xf32>
    %cst_22 = arith.constant 0.000000e+00 : f32
    %59 = vector.shape_cast %14 : vector<1x12xi1> to vector<1x12xi1>
    %60 = vector.broadcast %59 : vector<1x12xi1> to vector<32x12xi1>
    %61 = vector.broadcast %cst_22 : f32 to vector<32x12xf32>
    %62 = arith.select %60, %58, %61 : vector<32x12xi1>, vector<32x12xf32>
    %63 = arith.truncf %62 : vector<32x12xf32> to vector<32x12xbf16>
    %cst_23 = arith.constant 0.000000e+00 : f32
    %64 = vector.broadcast %cst_23 : f32 to vector<32x12xf32>
    %65 = vector.extract_strided_slice %2 {offsets = [3, 0], sizes = [1, 12], strides = [1, 1]} : vector<4x14xf32> to vector<1x12xf32>
    %c0_24 = arith.constant 0 : index
    %c0_25 = arith.constant 0 : index
    %c0_26 = arith.constant 0 : index
    %66 = vector.load %arg3[%c0_24, %c0_25, %c0_26] : memref<5x32x1xf32, #tpu.memory_space<vmem>>, vector<1x32x1xf32>
    %67 = vector.shape_cast %66 : vector<1x32x1xf32> to vector<32x1xf32>
    %68 = vector.broadcast %67 : vector<32x1xf32> to vector<32x12xf32>
    %69 = vector.broadcast %65 : vector<1x12xf32> to vector<32x12xf32>
    %70 = arith.mulf %68, %69 : vector<32x12xf32>
    %71 = arith.addf %64, %70 : vector<32x12xf32>
    %72 = vector.extract_strided_slice %2 {offsets = [0, 1], sizes = [1, 12], strides = [1, 1]} : vector<4x14xf32> to vector<1x12xf32>
    %c1_27 = arith.constant 1 : index
    %c0_28 = arith.constant 0 : index
    %c0_29 = arith.constant 0 : index
    %73 = vector.load %arg3[%c1_27, %c0_28, %c0_29] : memref<5x32x1xf32, #tpu.memory_space<vmem>>, vector<1x32x1xf32>
    %74 = vector.shape_cast %73 : vector<1x32x1xf32> to vector<32x1xf32>
    %75 = vector.broadcast %74 : vector<32x1xf32> to vector<32x12xf32>
    %76 = vector.broadcast %72 : vector<1x12xf32> to vector<32x12xf32>
    %77 = arith.mulf %75, %76 : vector<32x12xf32>
    %78 = arith.addf %71, %77 : vector<32x12xf32>
    %79 = vector.extract_strided_slice %2 {offsets = [1, 1], sizes = [1, 12], strides = [1, 1]} : vector<4x14xf32> to vector<1x12xf32>
    %c2_30 = arith.constant 2 : index
    %c0_31 = arith.constant 0 : index
    %c0_32 = arith.constant 0 : index
    %80 = vector.load %arg3[%c2_30, %c0_31, %c0_32] : memref<5x32x1xf32, #tpu.memory_space<vmem>>, vector<1x32x1xf32>
    %81 = vector.shape_cast %80 : vector<1x32x1xf32> to vector<32x1xf32>
    %82 = vector.broadcast %81 : vector<32x1xf32> to vector<32x12xf32>
    %83 = vector.broadcast %79 : vector<1x12xf32> to vector<32x12xf32>
    %84 = arith.mulf %82, %83 : vector<32x12xf32>
    %85 = arith.addf %78, %84 : vector<32x12xf32>
    %86 = vector.extract_strided_slice %2 {offsets = [2, 1], sizes = [1, 12], strides = [1, 1]} : vector<4x14xf32> to vector<1x12xf32>
    %c3_33 = arith.constant 3 : index
    %c0_34 = arith.constant 0 : index
    %c0_35 = arith.constant 0 : index
    %87 = vector.load %arg3[%c3_33, %c0_34, %c0_35] : memref<5x32x1xf32, #tpu.memory_space<vmem>>, vector<1x32x1xf32>
    %88 = vector.shape_cast %87 : vector<1x32x1xf32> to vector<32x1xf32>
    %89 = vector.broadcast %88 : vector<32x1xf32> to vector<32x12xf32>
    %90 = vector.broadcast %86 : vector<1x12xf32> to vector<32x12xf32>
    %91 = arith.mulf %89, %90 : vector<32x12xf32>
    %92 = arith.addf %85, %91 : vector<32x12xf32>
    %93 = vector.extract_strided_slice %2 {offsets = [3, 1], sizes = [1, 12], strides = [1, 1]} : vector<4x14xf32> to vector<1x12xf32>
    %c4_36 = arith.constant 4 : index
    %c0_37 = arith.constant 0 : index
    %c0_38 = arith.constant 0 : index
    %94 = vector.load %arg3[%c4_36, %c0_37, %c0_38] : memref<5x32x1xf32, #tpu.memory_space<vmem>>, vector<1x32x1xf32>
    %95 = vector.shape_cast %94 : vector<1x32x1xf32> to vector<32x1xf32>
    %96 = vector.broadcast %95 : vector<32x1xf32> to vector<32x12xf32>
    %97 = vector.broadcast %93 : vector<1x12xf32> to vector<32x12xf32>
    %98 = arith.mulf %96, %97 : vector<32x12xf32>
    %99 = arith.addf %92, %98 : vector<32x12xf32>
    %c0_39 = arith.constant 0 : index
    %c0_40 = arith.constant 0 : index
    %100 = vector.load %arg4[%c0_39, %c0_40] : memref<32x1xf32, #tpu.memory_space<vmem>>, vector<32x1xf32>
    %101 = vector.broadcast %100 : vector<32x1xf32> to vector<32x12xf32>
    %102 = arith.mulf %99, %101 : vector<32x12xf32>
    %c0_41 = arith.constant 0 : index
    %c0_42 = arith.constant 0 : index
    %103 = vector.load %arg5[%c0_41, %c0_42] : memref<32x1xf32, #tpu.memory_space<vmem>>, vector<32x1xf32>
    %104 = vector.broadcast %103 : vector<32x1xf32> to vector<32x12xf32>
    %105 = arith.addf %102, %104 : vector<32x12xf32>
    %cst_43 = arith.constant 0.000000e+00 : f32
    %106 = vector.broadcast %cst_43 : f32 to vector<32x12xf32>
    %107 = arith.maximumf %105, %106 : vector<32x12xf32>
    %cst_44 = arith.constant 0.000000e+00 : f32
    %108 = vector.shape_cast %14 : vector<1x12xi1> to vector<1x12xi1>
    %109 = vector.broadcast %108 : vector<1x12xi1> to vector<32x12xi1>
    %110 = vector.broadcast %cst_44 : f32 to vector<32x12xf32>
    %111 = arith.select %109, %107, %110 : vector<32x12xi1>, vector<32x12xf32>
    %112 = arith.truncf %111 : vector<32x12xf32> to vector<32x12xbf16>
    %cst_45 = arith.constant 0.000000e+00 : f32
    %113 = vector.broadcast %cst_45 : f32 to vector<32x12xf32>
    %114 = vector.extract_strided_slice %2 {offsets = [0, 1], sizes = [1, 12], strides = [1, 1]} : vector<4x14xf32> to vector<1x12xf32>
    %c0_46 = arith.constant 0 : index
    %c0_47 = arith.constant 0 : index
    %c0_48 = arith.constant 0 : index
    %115 = vector.load %arg3[%c0_46, %c0_47, %c0_48] : memref<5x32x1xf32, #tpu.memory_space<vmem>>, vector<1x32x1xf32>
    %116 = vector.shape_cast %115 : vector<1x32x1xf32> to vector<32x1xf32>
    %117 = vector.broadcast %116 : vector<32x1xf32> to vector<32x12xf32>
    %118 = vector.broadcast %114 : vector<1x12xf32> to vector<32x12xf32>
    %119 = arith.mulf %117, %118 : vector<32x12xf32>
    %120 = arith.addf %113, %119 : vector<32x12xf32>
    %121 = vector.extract_strided_slice %2 {offsets = [1, 1], sizes = [1, 12], strides = [1, 1]} : vector<4x14xf32> to vector<1x12xf32>
    %c1_49 = arith.constant 1 : index
    %c0_50 = arith.constant 0 : index
    %c0_51 = arith.constant 0 : index
    %122 = vector.load %arg3[%c1_49, %c0_50, %c0_51] : memref<5x32x1xf32, #tpu.memory_space<vmem>>, vector<1x32x1xf32>
    %123 = vector.shape_cast %122 : vector<1x32x1xf32> to vector<32x1xf32>
    %124 = vector.broadcast %123 : vector<32x1xf32> to vector<32x12xf32>
    %125 = vector.broadcast %121 : vector<1x12xf32> to vector<32x12xf32>
    %126 = arith.mulf %124, %125 : vector<32x12xf32>
    %127 = arith.addf %120, %126 : vector<32x12xf32>
    %128 = vector.extract_strided_slice %2 {offsets = [2, 1], sizes = [1, 12], strides = [1, 1]} : vector<4x14xf32> to vector<1x12xf32>
    %c2_52 = arith.constant 2 : index
    %c0_53 = arith.constant 0 : index
    %c0_54 = arith.constant 0 : index
    %129 = vector.load %arg3[%c2_52, %c0_53, %c0_54] : memref<5x32x1xf32, #tpu.memory_space<vmem>>, vector<1x32x1xf32>
    %130 = vector.shape_cast %129 : vector<1x32x1xf32> to vector<32x1xf32>
    %131 = vector.broadcast %130 : vector<32x1xf32> to vector<32x12xf32>
    %132 = vector.broadcast %128 : vector<1x12xf32> to vector<32x12xf32>
    %133 = arith.mulf %131, %132 : vector<32x12xf32>
    %134 = arith.addf %127, %133 : vector<32x12xf32>
    %135 = vector.extract_strided_slice %2 {offsets = [3, 1], sizes = [1, 12], strides = [1, 1]} : vector<4x14xf32> to vector<1x12xf32>
    %c3_55 = arith.constant 3 : index
    %c0_56 = arith.constant 0 : index
    %c0_57 = arith.constant 0 : index
    %136 = vector.load %arg3[%c3_55, %c0_56, %c0_57] : memref<5x32x1xf32, #tpu.memory_space<vmem>>, vector<1x32x1xf32>
    %137 = vector.shape_cast %136 : vector<1x32x1xf32> to vector<32x1xf32>
    %138 = vector.broadcast %137 : vector<32x1xf32> to vector<32x12xf32>
    %139 = vector.broadcast %135 : vector<1x12xf32> to vector<32x12xf32>
    %140 = arith.mulf %138, %139 : vector<32x12xf32>
    %141 = arith.addf %134, %140 : vector<32x12xf32>
    %142 = vector.extract_strided_slice %2 {offsets = [0, 2], sizes = [1, 12], strides = [1, 1]} : vector<4x14xf32> to vector<1x12xf32>
    %c4_58 = arith.constant 4 : index
    %c0_59 = arith.constant 0 : index
    %c0_60 = arith.constant 0 : index
    %143 = vector.load %arg3[%c4_58, %c0_59, %c0_60] : memref<5x32x1xf32, #tpu.memory_space<vmem>>, vector<1x32x1xf32>
    %144 = vector.shape_cast %143 : vector<1x32x1xf32> to vector<32x1xf32>
    %145 = vector.broadcast %144 : vector<32x1xf32> to vector<32x12xf32>
    %146 = vector.broadcast %142 : vector<1x12xf32> to vector<32x12xf32>
    %147 = arith.mulf %145, %146 : vector<32x12xf32>
    %148 = arith.addf %141, %147 : vector<32x12xf32>
    %c0_61 = arith.constant 0 : index
    %c0_62 = arith.constant 0 : index
    %149 = vector.load %arg4[%c0_61, %c0_62] : memref<32x1xf32, #tpu.memory_space<vmem>>, vector<32x1xf32>
    %150 = vector.broadcast %149 : vector<32x1xf32> to vector<32x12xf32>
    %151 = arith.mulf %148, %150 : vector<32x12xf32>
    %c0_63 = arith.constant 0 : index
    %c0_64 = arith.constant 0 : index
    %152 = vector.load %arg5[%c0_63, %c0_64] : memref<32x1xf32, #tpu.memory_space<vmem>>, vector<32x1xf32>
    %153 = vector.broadcast %152 : vector<32x1xf32> to vector<32x12xf32>
    %154 = arith.addf %151, %153 : vector<32x12xf32>
    %cst_65 = arith.constant 0.000000e+00 : f32
    %155 = vector.broadcast %cst_65 : f32 to vector<32x12xf32>
    %156 = arith.maximumf %154, %155 : vector<32x12xf32>
    %cst_66 = arith.constant 0.000000e+00 : f32
    %157 = vector.shape_cast %14 : vector<1x12xi1> to vector<1x12xi1>
    %158 = vector.broadcast %157 : vector<1x12xi1> to vector<32x12xi1>
    %159 = vector.broadcast %cst_66 : f32 to vector<32x12xf32>
    %160 = arith.select %158, %156, %159 : vector<32x12xi1>, vector<32x12xf32>
    %161 = arith.truncf %160 : vector<32x12xf32> to vector<32x12xbf16>
    %cst_67 = arith.constant 0.000000e+00 : f32
    %162 = vector.broadcast %cst_67 : f32 to vector<32x12xf32>
    %163 = vector.extract_strided_slice %2 {offsets = [1, 1], sizes = [1, 12], strides = [1, 1]} : vector<4x14xf32> to vector<1x12xf32>
    %c0_68 = arith.constant 0 : index
    %c0_69 = arith.constant 0 : index
    %c0_70 = arith.constant 0 : index
    %164 = vector.load %arg3[%c0_68, %c0_69, %c0_70] : memref<5x32x1xf32, #tpu.memory_space<vmem>>, vector<1x32x1xf32>
    %165 = vector.shape_cast %164 : vector<1x32x1xf32> to vector<32x1xf32>
    %166 = vector.broadcast %165 : vector<32x1xf32> to vector<32x12xf32>
    %167 = vector.broadcast %163 : vector<1x12xf32> to vector<32x12xf32>
    %168 = arith.mulf %166, %167 : vector<32x12xf32>
    %169 = arith.addf %162, %168 : vector<32x12xf32>
    %170 = vector.extract_strided_slice %2 {offsets = [2, 1], sizes = [1, 12], strides = [1, 1]} : vector<4x14xf32> to vector<1x12xf32>
    %c1_71 = arith.constant 1 : index
    %c0_72 = arith.constant 0 : index
    %c0_73 = arith.constant 0 : index
    %171 = vector.load %arg3[%c1_71, %c0_72, %c0_73] : memref<5x32x1xf32, #tpu.memory_space<vmem>>, vector<1x32x1xf32>
    %172 = vector.shape_cast %171 : vector<1x32x1xf32> to vector<32x1xf32>
    %173 = vector.broadcast %172 : vector<32x1xf32> to vector<32x12xf32>
    %174 = vector.broadcast %170 : vector<1x12xf32> to vector<32x12xf32>
    %175 = arith.mulf %173, %174 : vector<32x12xf32>
    %176 = arith.addf %169, %175 : vector<32x12xf32>
    %177 = vector.extract_strided_slice %2 {offsets = [3, 1], sizes = [1, 12], strides = [1, 1]} : vector<4x14xf32> to vector<1x12xf32>
    %c2_74 = arith.constant 2 : index
    %c0_75 = arith.constant 0 : index
    %c0_76 = arith.constant 0 : index
    %178 = vector.load %arg3[%c2_74, %c0_75, %c0_76] : memref<5x32x1xf32, #tpu.memory_space<vmem>>, vector<1x32x1xf32>
    %179 = vector.shape_cast %178 : vector<1x32x1xf32> to vector<32x1xf32>
    %180 = vector.broadcast %179 : vector<32x1xf32> to vector<32x12xf32>
    %181 = vector.broadcast %177 : vector<1x12xf32> to vector<32x12xf32>
    %182 = arith.mulf %180, %181 : vector<32x12xf32>
    %183 = arith.addf %176, %182 : vector<32x12xf32>
    %184 = vector.extract_strided_slice %2 {offsets = [0, 2], sizes = [1, 12], strides = [1, 1]} : vector<4x14xf32> to vector<1x12xf32>
    %c3_77 = arith.constant 3 : index
    %c0_78 = arith.constant 0 : index
    %c0_79 = arith.constant 0 : index
    %185 = vector.load %arg3[%c3_77, %c0_78, %c0_79] : memref<5x32x1xf32, #tpu.memory_space<vmem>>, vector<1x32x1xf32>
    %186 = vector.shape_cast %185 : vector<1x32x1xf32> to vector<32x1xf32>
    %187 = vector.broadcast %186 : vector<32x1xf32> to vector<32x12xf32>
    %188 = vector.broadcast %184 : vector<1x12xf32> to vector<32x12xf32>
    %189 = arith.mulf %187, %188 : vector<32x12xf32>
    %190 = arith.addf %183, %189 : vector<32x12xf32>
    %191 = vector.extract_strided_slice %2 {offsets = [1, 2], sizes = [1, 12], strides = [1, 1]} : vector<4x14xf32> to vector<1x12xf32>
    %c4_80 = arith.constant 4 : index
    %c0_81 = arith.constant 0 : index
    %c0_82 = arith.constant 0 : index
    %192 = vector.load %arg3[%c4_80, %c0_81, %c0_82] : memref<5x32x1xf32, #tpu.memory_space<vmem>>, vector<1x32x1xf32>
    %193 = vector.shape_cast %192 : vector<1x32x1xf32> to vector<32x1xf32>
    %194 = vector.broadcast %193 : vector<32x1xf32> to vector<32x12xf32>
    %195 = vector.broadcast %191 : vector<1x12xf32> to vector<32x12xf32>
    %196 = arith.mulf %194, %195 : vector<32x12xf32>
    %197 = arith.addf %190, %196 : vector<32x12xf32>
    %c0_83 = arith.constant 0 : index
    %c0_84 = arith.constant 0 : index
    %198 = vector.load %arg4[%c0_83, %c0_84] : memref<32x1xf32, #tpu.memory_space<vmem>>, vector<32x1xf32>
    %199 = vector.broadcast %198 : vector<32x1xf32> to vector<32x12xf32>
    %200 = arith.mulf %197, %199 : vector<32x12xf32>
    %c0_85 = arith.constant 0 : index
    %c0_86 = arith.constant 0 : index
    %201 = vector.load %arg5[%c0_85, %c0_86] : memref<32x1xf32, #tpu.memory_space<vmem>>, vector<32x1xf32>
    %202 = vector.broadcast %201 : vector<32x1xf32> to vector<32x12xf32>
    %203 = arith.addf %200, %202 : vector<32x12xf32>
    %cst_87 = arith.constant 0.000000e+00 : f32
    %204 = vector.broadcast %cst_87 : f32 to vector<32x12xf32>
    %205 = arith.maximumf %203, %204 : vector<32x12xf32>
    %cst_88 = arith.constant 0.000000e+00 : f32
    %206 = vector.shape_cast %14 : vector<1x12xi1> to vector<1x12xi1>
    %207 = vector.broadcast %206 : vector<1x12xi1> to vector<32x12xi1>
    %208 = vector.broadcast %cst_88 : f32 to vector<32x12xf32>
    %209 = arith.select %207, %205, %208 : vector<32x12xi1>, vector<32x12xf32>
    %210 = arith.truncf %209 : vector<32x12xf32> to vector<32x12xbf16>
    %211 = tpu.iota {dimensions = array<i32: 1>} : vector<1x10xi32>
    %c3_i32 = arith.constant 3 : i32
    %212 = arith.subi %0, %c3_i32 : i32
    %213 = vector.broadcast %212 : i32 to vector<1x10xi32>
    %214 = arith.addi %211, %213 : vector<1x10xi32>
    %c0_i32_89 = arith.constant 0 : i32
    %215 = vector.broadcast %c0_i32_89 : i32 to vector<1x10xi32>
    %216 = arith.cmpi sge, %214, %215 : vector<1x10xi32>
    %c3_i32_90 = arith.constant 3 : i32
    %217 = arith.subi %0, %c3_i32_90 : i32
    %218 = vector.broadcast %217 : i32 to vector<1x10xi32>
    %219 = arith.addi %211, %218 : vector<1x10xi32>
    %c4_i32_91 = arith.constant 4 : i32
    %220 = vector.broadcast %c4_i32_91 : i32 to vector<1x10xi32>
    %221 = arith.cmpi slt, %219, %220 : vector<1x10xi32>
    %222 = arith.andi %216, %221 : vector<1x10xi1>
    %c0_92 = arith.constant 0 : index
    %c0_93 = arith.constant 0 : index
    %223 = vector.load %arg6[%c0_92, %c0_93] : memref<64x224xbf16, #tpu.memory_space<vmem>>, vector<64x224xbf16>
    %224 = vector.extract_strided_slice %112 {offsets = [0, 0], sizes = [32, 10], strides = [1, 1]} : vector<32x12xbf16> to vector<32x10xbf16>
    %225 = vector.extract_strided_slice %161 {offsets = [0, 0], sizes = [32, 10], strides = [1, 1]} : vector<32x12xbf16> to vector<32x10xbf16>
    %226 = vector.extract_strided_slice %210 {offsets = [0, 0], sizes = [32, 10], strides = [1, 1]} : vector<32x12xbf16> to vector<32x10xbf16>
    %227 = vector.extract_strided_slice %63 {offsets = [0, 1], sizes = [32, 10], strides = [1, 1]} : vector<32x12xbf16> to vector<32x10xbf16>
    %228 = vector.extract_strided_slice %112 {offsets = [0, 1], sizes = [32, 10], strides = [1, 1]} : vector<32x12xbf16> to vector<32x10xbf16>
    %229 = vector.extract_strided_slice %161 {offsets = [0, 1], sizes = [32, 10], strides = [1, 1]} : vector<32x12xbf16> to vector<32x10xbf16>
    %230 = vector.extract_strided_slice %210 {offsets = [0, 1], sizes = [32, 10], strides = [1, 1]} : vector<32x12xbf16> to vector<32x10xbf16>
    %231 = tpu.concatenate %224, %225, %226, %227, %228, %229, %230 in 0 : vector<32x10xbf16>, vector<32x10xbf16>, vector<32x10xbf16>, vector<32x10xbf16>, vector<32x10xbf16>, vector<32x10xbf16>, vector<32x10xbf16> -> vector<224x10xbf16>
    %cst_94 = arith.constant dense<0.000000e+00> : vector<64x10xf32>
    %232 = tpu.matmul %223, %231, %cst_94 {dimension_numbers = #tpu.dot_dimension_numbers<[1], [0], [0], [1], [0, 0, 1, 1], [], []>} : vector<64x224xbf16>, vector<224x10xbf16>, vector<64x10xf32> -> vector<64x10xf32>
    %c0_95 = arith.constant 0 : index
    %c0_96 = arith.constant 0 : index
    %233 = vector.load %arg7[%c0_95, %c0_96] : memref<64x1xf32, #tpu.memory_space<vmem>>, vector<64x1xf32>
    %234 = vector.broadcast %233 : vector<64x1xf32> to vector<64x10xf32>
    %235 = arith.mulf %232, %234 : vector<64x10xf32>
    %c0_97 = arith.constant 0 : index
    %c0_98 = arith.constant 0 : index
    %236 = vector.load %arg8[%c0_97, %c0_98] : memref<64x1xf32, #tpu.memory_space<vmem>>, vector<64x1xf32>
    %237 = vector.broadcast %236 : vector<64x1xf32> to vector<64x10xf32>
    %238 = arith.addf %235, %237 : vector<64x10xf32>
    %cst_99 = arith.constant 0.000000e+00 : f32
    %239 = vector.broadcast %cst_99 : f32 to vector<64x10xf32>
    %240 = arith.maximumf %238, %239 : vector<64x10xf32>
    %cst_100 = arith.constant 0.000000e+00 : f32
    %241 = vector.shape_cast %222 : vector<1x10xi1> to vector<1x10xi1>
    %242 = vector.broadcast %241 : vector<1x10xi1> to vector<64x10xi1>
    %243 = vector.broadcast %cst_100 : f32 to vector<64x10xf32>
    %244 = arith.select %242, %240, %243 : vector<64x10xi1>, vector<64x10xf32>
    %245 = arith.truncf %244 : vector<64x10xf32> to vector<64x10xbf16>
    %246 = vector.extract_strided_slice %210 {offsets = [0, 0], sizes = [32, 10], strides = [1, 1]} : vector<32x12xbf16> to vector<32x10xbf16>
    %247 = vector.extract_strided_slice %63 {offsets = [0, 1], sizes = [32, 10], strides = [1, 1]} : vector<32x12xbf16> to vector<32x10xbf16>
    %248 = vector.extract_strided_slice %112 {offsets = [0, 1], sizes = [32, 10], strides = [1, 1]} : vector<32x12xbf16> to vector<32x10xbf16>
    %249 = vector.extract_strided_slice %161 {offsets = [0, 1], sizes = [32, 10], strides = [1, 1]} : vector<32x12xbf16> to vector<32x10xbf16>
    %250 = vector.extract_strided_slice %210 {offsets = [0, 1], sizes = [32, 10], strides = [1, 1]} : vector<32x12xbf16> to vector<32x10xbf16>
    %251 = vector.extract_strided_slice %63 {offsets = [0, 2], sizes = [32, 10], strides = [1, 1]} : vector<32x12xbf16> to vector<32x10xbf16>
    %252 = vector.extract_strided_slice %112 {offsets = [0, 2], sizes = [32, 10], strides = [1, 1]} : vector<32x12xbf16> to vector<32x10xbf16>
    %253 = tpu.concatenate %246, %247, %248, %249, %250, %251, %252 in 0 : vector<32x10xbf16>, vector<32x10xbf16>, vector<32x10xbf16>, vector<32x10xbf16>, vector<32x10xbf16>, vector<32x10xbf16>, vector<32x10xbf16> -> vector<224x10xbf16>
    %cst_101 = arith.constant dense<0.000000e+00> : vector<64x10xf32>
    %254 = tpu.matmul %223, %253, %cst_101 {dimension_numbers = #tpu.dot_dimension_numbers<[1], [0], [0], [1], [0, 0, 1, 1], [], []>} : vector<64x224xbf16>, vector<224x10xbf16>, vector<64x10xf32> -> vector<64x10xf32>
    %c0_102 = arith.constant 0 : index
    %c0_103 = arith.constant 0 : index
    %255 = vector.load %arg7[%c0_102, %c0_103] : memref<64x1xf32, #tpu.memory_space<vmem>>, vector<64x1xf32>
    %256 = vector.broadcast %255 : vector<64x1xf32> to vector<64x10xf32>
    %257 = arith.mulf %254, %256 : vector<64x10xf32>
    %c0_104 = arith.constant 0 : index
    %c0_105 = arith.constant 0 : index
    %258 = vector.load %arg8[%c0_104, %c0_105] : memref<64x1xf32, #tpu.memory_space<vmem>>, vector<64x1xf32>
    %259 = vector.broadcast %258 : vector<64x1xf32> to vector<64x10xf32>
    %260 = arith.addf %257, %259 : vector<64x10xf32>
    %cst_106 = arith.constant 0.000000e+00 : f32
    %261 = vector.broadcast %cst_106 : f32 to vector<64x10xf32>
    %262 = arith.maximumf %260, %261 : vector<64x10xf32>
    %cst_107 = arith.constant 0.000000e+00 : f32
    %263 = vector.shape_cast %222 : vector<1x10xi1> to vector<1x10xi1>
    %264 = vector.broadcast %263 : vector<1x10xi1> to vector<64x10xi1>
    %265 = vector.broadcast %cst_107 : f32 to vector<64x10xf32>
    %266 = arith.select %264, %262, %265 : vector<64x10xi1>, vector<64x10xf32>
    %267 = arith.truncf %266 : vector<64x10xf32> to vector<64x10xbf16>
    %c0_108 = arith.constant 0 : index
    %c0_109 = arith.constant 0 : index
    %268 = vector.load %arg9[%c0_108, %c0_109] : memref<128x576xbf16, #tpu.memory_space<vmem>>, vector<128x576xbf16>
    %269 = vector.extract_strided_slice %245 {offsets = [0, 0], sizes = [64, 6], strides = [1, 1]} : vector<64x10xbf16> to vector<64x6xbf16>
    %270 = vector.extract_strided_slice %267 {offsets = [0, 0], sizes = [64, 6], strides = [1, 1]} : vector<64x10xbf16> to vector<64x6xbf16>
    %271 = vector.extract_strided_slice %245 {offsets = [0, 1], sizes = [64, 6], strides = [1, 1]} : vector<64x10xbf16> to vector<64x6xbf16>
    %272 = vector.extract_strided_slice %267 {offsets = [0, 1], sizes = [64, 6], strides = [1, 1]} : vector<64x10xbf16> to vector<64x6xbf16>
    %273 = vector.extract_strided_slice %245 {offsets = [0, 2], sizes = [64, 6], strides = [1, 1]} : vector<64x10xbf16> to vector<64x6xbf16>
    %274 = vector.extract_strided_slice %267 {offsets = [0, 2], sizes = [64, 6], strides = [1, 1]} : vector<64x10xbf16> to vector<64x6xbf16>
    %275 = vector.extract_strided_slice %245 {offsets = [0, 3], sizes = [64, 6], strides = [1, 1]} : vector<64x10xbf16> to vector<64x6xbf16>
    %276 = vector.extract_strided_slice %267 {offsets = [0, 3], sizes = [64, 6], strides = [1, 1]} : vector<64x10xbf16> to vector<64x6xbf16>
    %277 = vector.extract_strided_slice %245 {offsets = [0, 4], sizes = [64, 6], strides = [1, 1]} : vector<64x10xbf16> to vector<64x6xbf16>
    %278 = tpu.concatenate %269, %270, %271, %272, %273, %274, %275, %276, %277 in 0 : vector<64x6xbf16>, vector<64x6xbf16>, vector<64x6xbf16>, vector<64x6xbf16>, vector<64x6xbf16>, vector<64x6xbf16>, vector<64x6xbf16>, vector<64x6xbf16>, vector<64x6xbf16> -> vector<576x6xbf16>
    %cst_110 = arith.constant dense<0.000000e+00> : vector<128x6xf32>
    %279 = tpu.matmul %268, %278, %cst_110 {dimension_numbers = #tpu.dot_dimension_numbers<[1], [0], [0], [1], [0, 0, 1, 1], [], []>} : vector<128x576xbf16>, vector<576x6xbf16>, vector<128x6xf32> -> vector<128x6xf32>
    %c0_111 = arith.constant 0 : index
    %c0_112 = arith.constant 0 : index
    %280 = vector.load %arg10[%c0_111, %c0_112] : memref<128x1xf32, #tpu.memory_space<vmem>>, vector<128x1xf32>
    %281 = vector.broadcast %280 : vector<128x1xf32> to vector<128x6xf32>
    %282 = arith.mulf %279, %281 : vector<128x6xf32>
    %c0_113 = arith.constant 0 : index
    %c0_114 = arith.constant 0 : index
    %283 = vector.load %arg11[%c0_113, %c0_114] : memref<128x1xf32, #tpu.memory_space<vmem>>, vector<128x1xf32>
    %284 = vector.broadcast %283 : vector<128x1xf32> to vector<128x6xf32>
    %285 = arith.addf %282, %284 : vector<128x6xf32>
    %cst_115 = arith.constant 0.000000e+00 : f32
    %286 = vector.broadcast %cst_115 : f32 to vector<128x6xf32>
    %287 = arith.maximumf %285, %286 : vector<128x6xf32>
    %c0_116 = arith.constant 0 : index
    %c0_117 = arith.constant 0 : index
    %288 = vector.load %arg12[%c0_116, %c0_117] : memref<1x128xf32, #tpu.memory_space<vmem>>, vector<1x128xf32>
    %cst_118 = arith.constant dense<0.000000e+00> : vector<1x6xf32>
    %289 = tpu.matmul %288, %287, %cst_118 {dimension_numbers = #tpu.dot_dimension_numbers<[1], [0], [0], [1], [0, 0, 1, 1], [], []>} : vector<1x128xf32>, vector<128x6xf32>, vector<1x6xf32> -> vector<1x6xf32>
    %c0_119 = arith.constant 0 : index
    %c0_120 = arith.constant 0 : index
    %290 = vector.load %arg13[%c0_119, %c0_120] : memref<1x1xf32, #tpu.memory_space<vmem>>, vector<1x1xf32>
    %291 = vector.broadcast %290 : vector<1x1xf32> to vector<1x6xf32>
    %292 = arith.addf %289, %291 : vector<1x6xf32>
    %293 = vector.extract_strided_slice %292 {offsets = [0, 1], sizes = [1, 4], strides = [1, 1]} : vector<1x6xf32> to vector<1x4xf32>
    %294 = vector.extract_strided_slice %292 {offsets = [0, 0], sizes = [1, 4], strides = [1, 1]} : vector<1x6xf32> to vector<1x4xf32>
    %295 = vector.extract_strided_slice %292 {offsets = [0, 2], sizes = [1, 4], strides = [1, 1]} : vector<1x6xf32> to vector<1x4xf32>
    %296 = tpu.iota {dimensions = array<i32: 1>} : vector<1x4xi32>
    %297 = vector.broadcast %0 : i32 to vector<1x4xi32>
    %298 = arith.addi %296, %297 : vector<1x4xi32>
    %c1_i32 = arith.constant 1 : i32
    %299 = vector.broadcast %c1_i32 : i32 to vector<1x4xi32>
    %300 = arith.subi %298, %299 : vector<1x4xi32>
    %c0_i32_121 = arith.constant 0 : i32
    %301 = vector.broadcast %c0_i32_121 : i32 to vector<1x4xi32>
    %302 = arith.cmpi sge, %300, %301 : vector<1x4xi32>
    %303 = arith.select %302, %294, %293 : vector<1x4xi1>, vector<1x4xf32>
    %c1_i32_122 = arith.constant 1 : i32
    %304 = vector.broadcast %c1_i32_122 : i32 to vector<1x4xi32>
    %305 = arith.addi %298, %304 : vector<1x4xi32>
    %c3_i32_123 = arith.constant 3 : i32
    %306 = vector.broadcast %c3_i32_123 : i32 to vector<1x4xi32>
    %307 = arith.cmpi sle, %305, %306 : vector<1x4xi32>
    %308 = arith.select %307, %295, %293 : vector<1x4xi1>, vector<1x4xf32>
    %cst_124 = arith.constant 3.750000e-01 : f32
    %309 = vector.broadcast %cst_124 : f32 to vector<1x4xf32>
    %310 = arith.mulf %309, %303 : vector<1x4xf32>
    %cst_125 = arith.constant 6.250000e-01 : f32
    %311 = vector.broadcast %cst_125 : f32 to vector<1x4xf32>
    %312 = arith.mulf %311, %293 : vector<1x4xf32>
    %313 = arith.addf %310, %312 : vector<1x4xf32>
    %cst_126 = arith.constant 1.250000e-01 : f32
    %314 = vector.broadcast %cst_126 : f32 to vector<1x4xf32>
    %315 = arith.mulf %314, %303 : vector<1x4xf32>
    %cst_127 = arith.constant 8.750000e-01 : f32
    %316 = vector.broadcast %cst_127 : f32 to vector<1x4xf32>
    %317 = arith.mulf %316, %293 : vector<1x4xf32>
    %318 = arith.addf %315, %317 : vector<1x4xf32>
    %cst_128 = arith.constant 8.750000e-01 : f32
    %319 = vector.broadcast %cst_128 : f32 to vector<1x4xf32>
    %320 = arith.mulf %319, %293 : vector<1x4xf32>
    %cst_129 = arith.constant 1.250000e-01 : f32
    %321 = vector.broadcast %cst_129 : f32 to vector<1x4xf32>
    %322 = arith.mulf %321, %308 : vector<1x4xf32>
    %323 = arith.addf %320, %322 : vector<1x4xf32>
    %cst_130 = arith.constant 6.250000e-01 : f32
    %324 = vector.broadcast %cst_130 : f32 to vector<1x4xf32>
    %325 = arith.mulf %324, %293 : vector<1x4xf32>
    %cst_131 = arith.constant 3.750000e-01 : f32
    %326 = vector.broadcast %cst_131 : f32 to vector<1x4xf32>
    %327 = arith.mulf %326, %308 : vector<1x4xf32>
    %328 = arith.addf %325, %327 : vector<1x4xf32>
    %329 = tpu.concatenate %313, %318, %323, %328 in 0 : vector<1x4xf32>, vector<1x4xf32>, vector<1x4xf32>, vector<1x4xf32> -> vector<4x4xf32>
    %c0_132 = arith.constant 0 : index
    %c0_133 = arith.constant 0 : index
    %c0_134 = arith.constant 0 : index
    %330 = vector.load %arg14[%c0_132, %c0_133, %c0_134] : memref<1x4x4xf32, #tpu.memory_space<vmem>>, vector<1x4x4xf32>
    %331 = vector.shape_cast %330 : vector<1x4x4xf32> to vector<4x4xf32>
    %332 = vector.shape_cast %329 : vector<4x4xf32> to vector<1x4x4xf32>
    tpu.vector_store %arg14[%c0_132, %c0_133, %c0_134], %332 {strides = array<i32>} : memref<1x4x4xf32, #tpu.memory_space<vmem>>, vector<1x4x4xf32>,
    return
  }
  func.func @transform_0(%arg0: i32, %arg1: i32) -> (i32, i32, i32, i32) {
    %c0_i32 = arith.constant 0 : i32
    %c0_i32_0 = arith.constant 0 : i32
    %c0_i32_1 = arith.constant 0 : i32
    return %arg0, %arg1, %c0_i32, %c0_i32_0 : i32, i32, i32, i32
  }
  func.func @transform_1(%arg0: i32, %arg1: i32) -> (i32, i32, i32) {
    %c0_i32 = arith.constant 0 : i32
    %c0_i32_0 = arith.constant 0 : i32
    %c0_i32_1 = arith.constant 0 : i32
    %c0_i32_2 = arith.constant 0 : i32
    return %c0_i32, %c0_i32_0, %c0_i32_1 : i32, i32, i32
  }
  func.func @transform_2(%arg0: i32, %arg1: i32) -> (i32, i32) {
    %c0_i32 = arith.constant 0 : i32
    %c0_i32_0 = arith.constant 0 : i32
    %c0_i32_1 = arith.constant 0 : i32
    return %c0_i32, %c0_i32_0 : i32, i32
  }
  func.func @transform_3(%arg0: i32, %arg1: i32) -> (i32, i32) {
    %c0_i32 = arith.constant 0 : i32
    %c0_i32_0 = arith.constant 0 : i32
    %c0_i32_1 = arith.constant 0 : i32
    return %c0_i32, %c0_i32_0 : i32, i32
  }
  func.func @transform_4(%arg0: i32, %arg1: i32) -> (i32, i32) {
    %c0_i32 = arith.constant 0 : i32
    %c0_i32_0 = arith.constant 0 : i32
    %c0_i32_1 = arith.constant 0 : i32
    return %c0_i32, %c0_i32_0 : i32, i32
  }
  func.func @transform_5(%arg0: i32, %arg1: i32) -> (i32, i32) {
    %c0_i32 = arith.constant 0 : i32
    %c0_i32_0 = arith.constant 0 : i32
    %c0_i32_1 = arith.constant 0 : i32
    return %c0_i32, %c0_i32_0 : i32, i32
  }
  func.func @transform_6(%arg0: i32, %arg1: i32) -> (i32, i32) {
    %c0_i32 = arith.constant 0 : i32
    %c0_i32_0 = arith.constant 0 : i32
    %c0_i32_1 = arith.constant 0 : i32
    return %c0_i32, %c0_i32_0 : i32, i32
  }
  func.func @transform_7(%arg0: i32, %arg1: i32) -> (i32, i32) {
    %c0_i32 = arith.constant 0 : i32
    %c0_i32_0 = arith.constant 0 : i32
    %c0_i32_1 = arith.constant 0 : i32
    return %c0_i32, %c0_i32_0 : i32, i32
  }
  func.func @transform_8(%arg0: i32, %arg1: i32) -> (i32, i32) {
    %c0_i32 = arith.constant 0 : i32
    %c0_i32_0 = arith.constant 0 : i32
    %c0_i32_1 = arith.constant 0 : i32
    return %c0_i32, %c0_i32_0 : i32, i32
  }
  func.func @transform_9(%arg0: i32, %arg1: i32) -> (i32, i32) {
    %c0_i32 = arith.constant 0 : i32
    %c0_i32_0 = arith.constant 0 : i32
    %c0_i32_1 = arith.constant 0 : i32
    return %c0_i32, %c0_i32_0 : i32, i32
  }
  func.func @transform_10(%arg0: i32, %arg1: i32) -> (i32, i32) {
    %c0_i32 = arith.constant 0 : i32
    %c0_i32_0 = arith.constant 0 : i32
    %c0_i32_1 = arith.constant 0 : i32
    return %c0_i32, %c0_i32_0 : i32, i32
  }
  func.func @transform_11(%arg0: i32, %arg1: i32) -> (i32, i32) {
    %c0_i32 = arith.constant 0 : i32
    %c0_i32_0 = arith.constant 0 : i32
    %c0_i32_1 = arith.constant 0 : i32
    return %c0_i32, %c0_i32_0 : i32, i32
  }
  func.func @transform_12(%arg0: i32, %arg1: i32) -> (i32, i32, i32) {
    %c0_i32 = arith.constant 0 : i32
    %c0_i32_0 = arith.constant 0 : i32
    return %arg0, %c0_i32, %arg1 : i32, i32, i32
  }
}

</mosaic_0001>

<bundles_post_ra>
// kernel: tpu_custom_call.1
= control target key start
LH: loop header
LB: loop body
LE: loop exit
PB: predicated region body
PF: predicated region fallthrough
CT: control target
= control target key end

     0   :  { %s4570_s0 = inlined_call_operand.vmem [shape: f32[2,1,4,14], index: 0, kind: input, shape index: {}]   ;;  %s4571_s1 = inlined_call_operand.vmem [shape: f32[5,32,1], index: 1, kind: input, shape index: {}]   ;;  %s4572_s2 = inlined_call_operand.vmem [shape: f32[32,1], index: 2, kind: input, shape index: {}]   ;;  %s4573_s3 = inlined_call_operand.vmem [shape: f32[32,1], index: 3, kind: input, shape index: {}]   ;;  %s4574_s4 = inlined_call_operand.vmem [shape: bf16[64,224], index: 4, kind: input, shape index: {}]   ;;  %s4575_s5 = inlined_call_operand.vmem [shape: f32[64,1], index: 5, kind: input, shape index: {}]   ;;  %s4576_s6 = inlined_call_operand.vmem [shape: f32[64,1], index: 6, kind: input, shape index: {}]   ;;  %s4577_s7 = inlined_call_operand.vmem [shape: bf16[128,576], index: 7, kind: input, shape index: {}]   ;;  %s4578_s8 = inlined_call_operand.vmem [shape: f32[128,1], index: 8, kind: input, shape index: {}]   ;;  %s4579_s9 = inlined_call_operand.vmem [shape: f32[128,1], index: 9, kind: input, shape index: {}]   ;;  %s4580_s10 = inlined_call_operand.vmem [shape: f32[1,128], index: 10, kind: input, shape index: {}]   ;;  %s4581_s11 = inlined_call_operand.<no memory space> [shape: f32[1,1], index: 11, kind: input, shape index: {}]   ;;  %s4582_s12 = inlined_call_operand.hbm [shape: f32[2,4,4], index: 12, kind: output, shape index: {}]  }
   0x1   :  { %4594 = sst [smem:[#allocation36_spill]] %s4570_s0  ;;  %v17_v0 = vstv %s4581_s11 }
   0x2   :  { %4595 = sst [smem:[#allocation37_spill]] %s4571_s1  ;;  %18 = vst [vmem:[#allocation2] sm:$0x1] %v17_v0 }
   0x3   :  { %4596 = sst [smem:[#allocation38_spill]] %s4572_s2 }
   0x4   :  { %19 = vsyncpa [#allocation4], 0 }
   0x5   :  { %21 = vsyncpa [#allocation4 + $0x1], 0  ;;  %s3257_s23 = smov 0   ;;  %s3259_s24 = smov 0  }
   0x6   :  { %s3261_s25 = smov 0   ;;  %s3263_s26 = smov 0  }
   0x7   :  { %s3265_s27 = smov 0   ;;  %s3267_s28 = smov 0  }
   0x8 LB: > { %s2593_s11 = sadd.s32 4294967295, %s3178_s28   ;;  %s2594_s29 = sadd.s32 4294967294, %s3178_s28   ;;  %s3178_s28 = sphi %s3267_s28, %s27_s28   ;;  %s3174_s27 = sphi %s3265_s27, %s4678_s27   ;;  %s3170_s26 = sphi %s3263_s26, %s4677_s26   ;;  %s3166_s25 = sphi %s3261_s25, %s4676_s25   ;;  %s3162_s24 = sphi %s3259_s24, %s4675_s24   ;;  %s3158_s23 = sphi %s3257_s23, %s4674_s23  }
   0x9   : > { %s39_s30 = sadd.s32 1, %s3174_s27  ;;  %s307_s13 = sadd.s32 1, %s3166_s25 }
   0xa   : > { %p41_p0 = scmp.ge.s32.totalorder %s39_s30, 2  ;;  %p317_p1 = scmp.ne.s32.totalorder %s3166_s25, %s3162_s24 }
   0xb   : > { %p318_p2 = scmp.eq.s32.totalorder %s2593_s11, 1  ;;  %p323_p3 = scmp.ne.s32.totalorder %s3162_s24, %s3158_s23 }
   0xc   : > { %s4680_s30 = smov (%p41_p0, %s39_s30), 0  ;;  %p324_p5 = scmp.eq.s32.totalorder %s2594_s29, 1 }
   0xd   : > { %4597 = sst [smem:[#allocation6_spill]] %s4680_s30  ;;  %p3297_p4 = por %p318_p2, %p317_p1 }
   0xe   : > { %s302_s15 = ssub.s32 %s3174_s27, %s4680_s30  ;;  %p2597_p6 = scmp.ge.s32.totalorder %s3178_s28, 1 }
   0xf   : > { %p305_p7 = scmp.eq.s32.totalorder %s302_s15, 0  ;;  %p3304_p8 = por %p324_p5, %p323_p3 }
  0x10   : > { %p385_p9 = scmp.lt.s32.totalorder %s3178_s28, 3 }
  0x11   : > { %s3310_s17 = scalar_select %p305_p7, %s3166_s25, %s307_s13  }
  0x12   : > { %p386_p10 = pnand %p2597_p6, %p385_p9 }
  0x14   : > { %389 = sbr.rel (%p386_p10) target bundleno = 1840 (0x730), region = 68 }
  0x19   : > { %s4600_s1 = sld [smem:[#allocation37_spill]]  ;;  %v3180_v3 = vmov 0   ;;  %v706_v24 = vld [vmem:[%s4573_s3 + $0x18] sm:$0xff]  ;;  %v705_v25 = vld [vmem:[%s4573_s3 + $0x10] sm:$0xff]  ;;  %v704_v28 = vld [vmem:[%s4573_s3 + $0x8] sm:$0xff]  ;;  %p429_p11 = scmp.lt.s32.totalorder %s3170_s26, 1  ;;  %v439_v30 = vlaneseq }
  0x1a   : > { %3013 = vset.pattern.permute.xlu1 %v3180_v3  ;;  %3012 = vset.pattern.permute.xlu0 %v3180_v3  ;;  %s4601_s2 = sld [smem:[#allocation38_spill]]  ;;  %v703_v29 = vld [vmem:[%s4573_s3] sm:$0xff]  ;;  %s4586_s20 = smov 127   ;;  %vm1143_vm3 = vcmask 785408   ;;  %vm1808_vm9 = vcmask 523264   ;;  %vm3186_vm10 = vmmov 0  }
  0x1b   : > { %1367 = vmatprep.subr.bf16.mxu1 %v3180_v3  ;;  %1156 = vmatprep.subr.bf16.mxu0 %v3180_v3  ;;  %s430_s30 = scalar_select %p429_p11, %s3170_s26, 1  ;;  %v3403_v31 = vshrl.u32 %v439_v30, 7  ;;  %vm2499_vm13 = vcmask 1040384   ;;  %vm2501_vm14 = vcmask 1041408   ;;  %vm2503_vm15 = vcmask 1042432  }
  0x1c   : > { %s4603_s0 = sld [smem:[#allocation36_spill]]  ;;  %s4584_s21 = smov 126  }
  0x1d   : > { %s2599_s13 = sshll.u32 %s430_s30, 2  ;;  %4602 = vst [vmem:[#allocation7_spill] sm:$0xff] %v3403_v31  ;;  %v4588_v32 = vsub.s32 0, %v3403_v31  ;;  %v600_v42 = vsub.s32 1, %v3403_v31  ;;  %v473_v52 = vsub.s32 2, %v3403_v31  ;;  %v510_v53 = vsub.s32 3, %v3403_v31 }
  0x1e   : > { %s4611_s22 = smov 127   ;;  %s3183_s11 = smov 125  }
  0x1f   : > { %v2612_v1 = vld [vmem:[%s4600_s1 + $0x80] sm:$0xff]  ;;  %v2614_v2 = vld [vmem:[%s4600_s1 + $0x90] sm:$0xff]  ;;  %v2613_v4 = vld [vmem:[%s4600_s1 + $0x88] sm:$0xff]  ;;  %s4612_s29 = smov 126   ;;  %s3184_s15 = smov 124  }
  0x20   : > { %633 = vperm.xlu1 %3013, %v2612_v1   ;;  %643 = vperm.xlu0 %3012, %v2614_v2   ;;  %v2615_v5 = vld [vmem:[%s4600_s1 + $0x98] sm:$0xff]  ;;  %v2610_v7 = vld [vmem:[%s4600_s1 + $0x70] sm:$0xff]  ;;  %v2609_v8 = vld [vmem:[%s4600_s1 + $0x68] sm:$0xff]  ;;  %s3187_s18 = smov 1  }
  0x21   : > { %v2611_v6 = vld [vmem:[%s4600_s1 + $0x78] sm:$0xff]  ;;  %v2608_v9 = vld [vmem:[%s4600_s1 + $0x60] sm:$0xff]  ;;  %v449_v11 = vld [vmem:[%s4600_s1 + $0x10] sm:$0xff] }
  0x22   : > { %v450_v10 = vld [vmem:[%s4600_s1 + $0x18] sm:$0xff]  ;;  %v2602_v13 = vld [vmem:[%s4600_s1 + $0x30] sm:$0xff]  ;;  %v448_v16 = vld [vmem:[%s4600_s1 + $0x8] sm:$0xff]  ;;  %s435_s19 = scalar_lea.vmem %s4603_s0, %s2599_s13 }
  0x23   : > { %v2603_v12 = vld [vmem:[%s4600_s1 + $0x38] sm:$0xff]  ;;  %v2606_v15 = vld [vmem:[%s4600_s1 + $0x50] sm:$0xff]  ;;  %v447_v17 = vld [vmem:[%s4600_s1] sm:$0xff] }
  0x24   : > { %638 = vperm.xlu1 %3013, %v2613_v4   ;;  %648 = vperm.xlu0 %3012, %v2615_v5   ;;  %v2607_v14 = vld [vmem:[%s4600_s1 + $0x58] sm:$0xff]  ;;  %v2601_v18 = vld [vmem:[%s4600_s1 + $0x28] sm:$0xff]  ;;  %v2600_v19 = vld [vmem:[%s4600_s1 + $0x20] sm:$0xff] }
  0x25   : > { %v2605_v20 = vld [vmem:[%s4600_s1 + $0x48] sm:$0xff]  ;;  %v2604_v21 = vld [vmem:[%s4600_s1 + $0x40] sm:$0xff]  ;;  %v678_v22 = vld [vmem:[%s4601_s2 + $0x18] sm:$0xff] }
  0x26   : > { %v677_v23 = vld [vmem:[%s4601_s2 + $0x10] sm:$0xff]  ;;  %v676_v26 = vld [vmem:[%s4601_s2 + $0x8] sm:$0xff]  ;;  %v675_v27 = vld [vmem:[%s4601_s2] sm:$0xff] }
  0x27   : > { %v438_v33 = vld [vmem:[%s435_s19] sm:$0xf] }
  0x28   : > { %595 = vperm.xlu1 %3013, %v2611_v6   ;;  %590 = vperm.xlu0 %3012, %v2610_v7   ;;  %v3411_v34 = vrot.slane %v438_v33, %v4588_v32  ;;  %v3439_v47 = vrot.slane %v438_v33, %v600_v42  ;;  %v3463_v58 = vrot.slane %v438_v33, %v473_v52 }
  0x29   : > { %v3471_v61 = vrot.slane %v438_v33, %v510_v53 }
  0x2c   : > { %585 = vperm.xlu1 %3013, %v2609_v8   ;;  %580 = vperm.xlu0 %3012, %v2608_v9  }
  0x30   : > { %468 = vperm.xlu1 %3013, %v450_v10   ;;  %463 = vperm.xlu0 %3012, %v449_v11  }
  0x34   : > { %505 = vperm.xlu1 %3013, %v2603_v12   ;;  %500 = vperm.xlu0 %3012, %v2602_v13  }
  0x38   : > { %542 = vperm.xlu1 %3013, %v2607_v14   ;;  %537 = vperm.xlu0 %3012, %v2606_v15  }
  0x3c   : > { %458 = vperm.xlu1 %3013, %v448_v16   ;;  %453 = vperm.xlu0 %3012, %v447_v17  }
  0x40   : > { %495 = vperm.xlu1 %3013, %v2601_v18   ;;  %490 = vperm.xlu0 %3012, %v2600_v19  }
  0x44   : > { %532 = vperm.xlu1 %3013, %v2605_v20   ;;  %527 = vperm.xlu0 %3012, %v2604_v21  }
  0x48   : > { %696 = vperm.xlu1 %3013, %v678_v22   ;;  %691 = vperm.xlu0 %3012, %v677_v23  }
  0x4c   : > { %724 = vperm.xlu1 %3013, %v706_v24   ;;  %719 = vperm.xlu0 %3012, %v705_v25  }
  0x50   : > { %686 = vperm.xlu1 %3013, %v676_v26   ;;  %681 = vperm.xlu0 %3012, %v675_v27  }
  0x54   : > { %714 = vperm.xlu1 %3013, %v704_v28   ;;  %709 = vperm.xlu0 %3012, %v703_v29  }
  0x9b   : > { %v3413_v35 = vpop.permute.xlu1 %633  ;;  %v3415_v36 = vpop.permute.xlu0 %643 }
  0x9c   : > { %v899_v37 = vmul.f32 %v3415_v36, %v3411_v34  ;;  %v897_v38 = vmul.f32 %v3413_v35, %v3411_v34  ;;  %v1005_v51 = vmul.f32 %v3415_v36, %v3439_v47  ;;  %v1003_v60 = vmul.f32 %v3413_v35, %v3439_v47 }
  0x9e   : > { %909 = vrot.lane.b32.xlu0 %v899_v37, %s4586_s20 }
  0x9f   : > { %v3422_v39 = vpop.permute.xlu1 %638  ;;  %v3424_v40 = vpop.permute.xlu0 %648 }
  0xa0   : > { %v900_v41 = vmul.f32 %v3424_v40, %v3411_v34  ;;  %v898_v45 = vmul.f32 %v3422_v39, %v3411_v34  ;;  %v1006_v56 = vmul.f32 %v3424_v40, %v3439_v47  ;;  %v1004_v21 = vmul.f32 %v3422_v39, %v3439_v47 }
  0xa2   : > { %911 = vrot.lane.b32.xlu1 %v900_v41, %s4586_s20  ;;  %905 = vrot.lane.b32.xlu0 %v897_v38, %s4586_s20 }
  0xa3   : > { %v3431_v43 = vpop.permute.xlu1 %595  ;;  %v3433_v44 = vpop.permute.xlu0 %590 }
  0xa4   : > { %v981_v46 = vmul.f32 %v3433_v44, %v3411_v34  ;;  %v982_v50 = vmul.f32 %v3431_v43, %v3411_v34  ;;  %v891_v27 = vmul.f32 %v3433_v44, %v3471_v61  ;;  %v892_v28 = vmul.f32 %v3431_v43, %v3471_v61 }
  0xa6   : > { %907 = vrot.lane.b32.xlu1 %v898_v45, %s4586_s20  ;;  %991 = vrot.lane.b32.xlu0 %v981_v46, %s4586_s20 }
  0xa7   : > { %v3443_v48 = vpop.permute.xlu1 %585  ;;  %v3445_v49 = vpop.permute.xlu0 %580 }
  0xa8   : > { %v979_v57 = vmul.f32 %v3445_v49, %v3411_v34  ;;  %v980_v59 = vmul.f32 %v3443_v48, %v3411_v34 }
  0xaa   : > { %993 = vrot.lane.b32.xlu1 %v982_v50, %s4586_s20  ;;  %1015 = vrot.lane.b32.xlu0 %v1005_v51, %s4586_s20 }
  0xab   : > { %v3455_v54 = vpop.permute.xlu1 %468  ;;  %v3457_v55 = vpop.permute.xlu0 %463 }
  0xac   : > { %v868_v62 = vmul.f32 %v3411_v34, %v3455_v54  ;;  %v867_v63 = vmul.f32 %v3411_v34, %v3457_v55  ;;  %v957_v2 = vmul.f32 %v3439_v47, %v3457_v55  ;;  %v958_v4 = vmul.f32 %v3439_v47, %v3455_v54 }
  0xad   : > { %v478_v7 = vmul.f32 %v3463_v58, %v3455_v54  ;;  %v477_v8 = vmul.f32 %v3463_v58, %v3457_v55 }
  0xae   : > { %1017 = vrot.lane.b32.xlu1 %v1006_v56, %s4586_s20  ;;  %987 = vrot.lane.b32.xlu0 %v979_v57, %s4586_s20 }
  0xaf   : > { %v506_v0 = vpop.permute.xlu1 %505  ;;  %v501_v1 = vpop.permute.xlu0 %500 }
  0xb0   : > { %v876_v5 = vmul.f32 %v3439_v47, %v506_v0  ;;  %v875_v6 = vmul.f32 %v3439_v47, %v501_v1  ;;  %v965_v9 = vmul.f32 %v501_v1, %v3463_v58  ;;  %v966_v10 = vmul.f32 %v506_v0, %v3463_v58 }
  0xb1   : > { %v515_v11 = vmul.f32 %v3471_v61, %v506_v0  ;;  %v514_v12 = vmul.f32 %v3471_v61, %v501_v1  ;;  %v753_v22 = vmul.f32 %v3411_v34, %v501_v1  ;;  %v754_v45 = vmul.f32 %v3411_v34, %v506_v0 }
  0xb2   : > { %989 = vrot.lane.b32.xlu1 %v980_v59, %s4586_s20  ;;  %1011 = vrot.lane.b32.xlu0 %v1003_v60, %s4586_s20  ;;  %v879_v13 = vadd.f32 %v875_v6, %v867_v63  ;;  %v880_v14 = vadd.f32 %v876_v5, %v868_v62  ;;  %v969_v17 = vadd.f32 %v965_v9, %v957_v2 }
  0xb3   : > { %v3493_v15 = vpop.permute.xlu1 %542  ;;  %v3495_v16 = vpop.permute.xlu0 %537  ;;  %v970_v18 = vadd.f32 %v966_v10, %v958_v4  ;;  %v3497_v19 = vadd.f32 %v515_v11, %v478_v7  ;;  %v3499_v20 = vadd.f32 %v514_v12, %v477_v8 }
  0xb4   : > { %v883_v23 = vmul.f32 %v3495_v16, %v3463_v58  ;;  %v884_v24 = vmul.f32 %v3493_v15, %v3463_v58  ;;  %v973_v25 = vmul.f32 %v3495_v16, %v3471_v61  ;;  %v974_v26 = vmul.f32 %v3493_v15, %v3471_v61 }
  0xb5   : > { %v777_v46 = vmul.f32 %v3439_v47, %v3495_v16  ;;  %v778_v53 = vmul.f32 %v3439_v47, %v3493_v15 }
  0xb6   : > { %1013 = vrot.lane.b32.xlu1 %v1004_v21, %s4586_s20  ;;  %763 = vrot.lane.b32.xlu0 %v753_v22, %s4586_s20  ;;  %v887_v37 = vadd.f32 %v883_v23, %v879_v13  ;;  %v888_v38 = vadd.f32 %v884_v24, %v880_v14  ;;  %v3522_v41 = vadd.f32 %v973_v25, %v969_v17 }
  0xb7   : > { %v3518_v29 = vpop.permute.xlu1 %458  ;;  %v3520_v33 = vpop.permute.xlu0 %453  ;;  %v3524_v42 = vadd.f32 %v974_v26, %v970_v18  ;;  %v801_v22 = vmul.f32 %v3433_v44, %v3463_v58 }
  0xb8   : > { %v3529_v50 = vadd.f32 %v891_v27, %v887_v37  ;;  %v3531_v51 = vadd.f32 %v892_v28, %v888_v38  ;;  %v866_v52 = vmul.f32 %v3411_v34, %v3518_v29  ;;  %v865_v56 = vmul.f32 %v3411_v34, %v3520_v33 }
  0xb9   : > { %v955_v60 = vmul.f32 %v3439_v47, %v3520_v33  ;;  %v956_v62 = vmul.f32 %v3439_v47, %v3518_v29  ;;  %v475_v63 = vmul.f32 %v3463_v58, %v3520_v33  ;;  %v476_v4 = vmul.f32 %v3463_v58, %v3518_v29 }
  0xba   : > { %765 = vrot.lane.b32.xlu1 %v754_v45, %s4586_s20  ;;  %787 = vrot.lane.b32.xlu0 %v777_v46, %s4586_s20  ;;  %v889_v27 = vmul.f32 %v3445_v49, %v3471_v61  ;;  %v890_v28 = vmul.f32 %v3443_v48, %v3471_v61 }
  0xbb   : > { %v496_v57 = vpop.permute.xlu1 %495  ;;  %v491_v59 = vpop.permute.xlu0 %490 }
  0xbc   : > { %v874_v0 = vmul.f32 %v3439_v47, %v496_v57  ;;  %v873_v1 = vmul.f32 %v3439_v47, %v491_v59  ;;  %v751_v2 = vmul.f32 %v3411_v34, %v491_v59  ;;  %v963_v5 = vmul.f32 %v491_v59, %v3463_v58 }
  0xbd   : > { %v964_v6 = vmul.f32 %v496_v57, %v3463_v58  ;;  %v512_v7 = vmul.f32 %v3471_v61, %v491_v59  ;;  %v513_v8 = vmul.f32 %v3471_v61, %v496_v57  ;;  %v752_v21 = vmul.f32 %v3411_v34, %v496_v57 }
  0xbe   : > { %789 = vrot.lane.b32.xlu1 %v778_v53, %s4586_s20  ;;  %759 = vrot.lane.b32.xlu0 %v751_v2, %s4586_s20  ;;  %v877_v9 = vadd.f32 %v873_v1, %v865_v56  ;;  %v878_v10 = vadd.f32 %v874_v0, %v866_v52  ;;  %v967_v13 = vadd.f32 %v963_v5, %v955_v60 }
  0xbf   : > { %v533_v11 = vpop.permute.xlu1 %532  ;;  %v528_v12 = vpop.permute.xlu0 %527  ;;  %v968_v14 = vadd.f32 %v964_v6, %v956_v62  ;;  %v3558_v17 = vadd.f32 %v512_v7, %v475_v63  ;;  %v3560_v18 = vadd.f32 %v513_v8, %v476_v4  ;;  %v802_v52 = vmul.f32 %v3431_v43, %v3463_v58 }
  0xc0   : > { %v881_v23 = vmul.f32 %v528_v12, %v3463_v58  ;;  %v882_v24 = vmul.f32 %v533_v11, %v3463_v58  ;;  %v971_v25 = vmul.f32 %v528_v12, %v3471_v61  ;;  %v972_v26 = vmul.f32 %v533_v11, %v3471_v61 }
  0xc1   : > { %v775_v53 = vmul.f32 %v3439_v47, %v528_v12  ;;  %v776_v59 = vmul.f32 %v3439_v47, %v533_v11  ;;  %v825_v60 = vmul.f32 %v3415_v36, %v3471_v61  ;;  %v826_v62 = vmul.f32 %v3424_v40, %v3471_v61 }
  0xc2   : > { %761 = vrot.lane.b32.xlu1 %v752_v21, %s4586_s20  ;;  %811 = vrot.lane.b32.xlu0 %v801_v22, %s4586_s20  ;;  %v885_v37 = vadd.f32 %v881_v23, %v877_v9  ;;  %v886_v38 = vadd.f32 %v882_v24, %v878_v10  ;;  %v3575_v45 = vadd.f32 %v971_v25, %v967_v13 }
  0xc3   : > { %v3577_v46 = vadd.f32 %v972_v26, %v968_v14  ;;  %v800_v63 = vmul.f32 %v3443_v48, %v3463_v58  ;;  %v552_v0 = vmul.f32 %v3411_v34, %v3493_v15  ;;  %v799_v1 = vmul.f32 %v3445_v49, %v3463_v58  ;;  %v3623_v8 = vpop.permute.xlu0 %691  ;;  %v3625_v9 = vpop.permute.xlu1 %696 }
  0xc4   : > { %v893_v56 = vadd.f32 %v889_v27, %v885_v37  ;;  %v894_v57 = vadd.f32 %v890_v28, %v886_v38  ;;  %v824_v2 = vmul.f32 %v3422_v39, %v3471_v61  ;;  %v551_v4 = vmul.f32 %v3411_v34, %v3495_v16 }
  0xc5   : > { %v604_v15 = vmul.f32 %v3439_v47, %v3433_v44  ;;  %v823_v5 = vmul.f32 %v3413_v35, %v3471_v61  ;;  %v549_v6 = vmul.f32 %v3411_v34, %v528_v12  ;;  %v605_v7 = vmul.f32 %v3439_v47, %v3431_v43 }
  0xc6   : > { %813 = vrot.lane.b32.xlu1 %v802_v52, %s4586_s20  ;;  %783 = vrot.lane.b32.xlu0 %v775_v53, %s4586_s20  ;;  %v550_v16 = vmul.f32 %v3411_v34, %v533_v11  ;;  %v654_v44 = vmul.f32 %v3424_v40, %v3463_v58 }
  0xc7   : > { %v3627_v10 = vpop.permute.xlu0 %719  ;;  %v3629_v43 = vpop.permute.xlu1 %724 }
  0xca   : > { %785 = vrot.lane.b32.xlu1 %v776_v59, %s4586_s20  ;;  %835 = vrot.lane.b32.xlu0 %v825_v60, %s4586_s20 }
  0xcb   : > { %v3631_v12 = vpop.permute.xlu0 %681  ;;  %v3633_v13 = vpop.permute.xlu1 %686 }
  0xce   : > { %837 = vrot.lane.b32.xlu1 %v826_v62, %s4586_s20  ;;  %809 = vrot.lane.b32.xlu0 %v800_v63, %s4586_s20 }
  0xcf   : > { %v3635_v34 = vpop.permute.xlu0 %709  ;;  %v3637_v11 = vpop.permute.xlu1 %714 }
  0xd2   : > { %563 = vrot.lane.b32.xlu0 %v552_v0, %s4586_s20  ;;  %807 = vrot.lane.b32.xlu1 %v799_v1, %s4586_s20 }
  0xd6   : > { %833 = vrot.lane.b32.xlu0 %v824_v2, %s4586_s20  ;;  %561 = vrot.lane.b32.xlu1 %v551_v4, %s4586_s20 }
  0xda   : > { %614 = vrot.lane.b32.xlu0 %v604_v15, %s4586_s20  ;;  %831 = vrot.lane.b32.xlu1 %v823_v5, %s4586_s20 }
  0xde   : > { %557 = vrot.lane.b32.xlu0 %v549_v6, %s4586_s20  ;;  %616 = vrot.lane.b32.xlu1 %v605_v7, %s4586_s20 }
  0xe2   : > { %559 = vrot.lane.b32.xlu1 %v550_v16, %s4586_s20 }
  0xe6   : > { %665 = vrot.lane.b32.xlu1 %v654_v44, %s4586_s20 }
 0x110   : > { %v910_v14 = vpop.permute.xlu0 %909 }
 0x111   : > { %v919_v40 = vadd.f32 %v910_v14, %v3529_v50 }
 0x113   : > { %v923_v21 = vmul.f32 %v919_v40, %v3623_v8 }
 0x114   : > { %v912_v22 = vpop.permute.xlu1 %911  ;;  %v906_v23 = vpop.permute.xlu0 %905 }
 0x115   : > { %v920_v24 = vadd.f32 %v912_v22, %v3531_v51  ;;  %v917_v25 = vadd.f32 %v906_v23, %v893_v56  ;;  %v927_v26 = vadd.f32 %v923_v21, %v3627_v10 }
 0x117   : > { %v924_v27 = vmul.f32 %v920_v24, %v3625_v9  ;;  %v921_v28 = vmul.f32 %v917_v25, %v3631_v12  ;;  %v931_v59 = vmax.f32 %v927_v26, 0.0  ;;  %v603_v25 = vmul.f32 %v3439_v47, %v3443_v48 }
 0x118   : > { %v908_v37 = vpop.permute.xlu1 %907  ;;  %v992_v38 = vpop.permute.xlu0 %991  ;;  %v651_v48 = vmul.f32 %v3413_v35, %v3463_v58 }
 0x119   : > { %v928_v52 = vadd.f32 %v924_v27, %v3629_v43  ;;  %v918_v53 = vadd.f32 %v908_v37, %v894_v57  ;;  %v925_v50 = vadd.f32 %v921_v28, %v3635_v34  ;;  %v1001_v62 = vadd.f32 %v992_v38, %v3522_v41 }
 0x11a   : > { %v653_v41 = vmul.f32 %v3415_v36, %v3463_v58  ;;  %v602_v36 = vmul.f32 %v3439_v47, %v3445_v49 }
 0x11b   : > { %v922_v60 = vmul.f32 %v918_v53, %v3633_v13  ;;  %v932_v51 = vmax.f32 %v928_v52, 0.0  ;;  %v929_v57 = vmax.f32 %v925_v50, 0.0  ;;  %v652_v53 = vmul.f32 %v3422_v39, %v3463_v58 }
 0x11c   : > { %v994_v56 = vpop.permute.xlu1 %993  ;;  %v1016_v63 = vpop.permute.xlu0 %1015 }
 0x11d   : > { %v926_v0 = vadd.f32 %v922_v60, %v3637_v11  ;;  %v1025_v1 = vadd.f32 %v1016_v63, %v1001_v62  ;;  %v3014_v2 = vpack.i.bf16 %v932_v51, %v931_v59  ;;  %v1002_v4 = vadd.f32 %v994_v56, %v3524_v42 }
 0x11f   : > { %v1029_v15 = vmul.f32 %v1025_v1, %v3623_v8  ;;  %3015 = vrot.lane.b32.xlu0 %v3014_v2, %s4586_s20  ;;  %v930_v5 = vmax.f32 %v926_v0, 0.0  ;;  %v745_v0 = vmul.f32 %v3471_v61, %v3457_v55  ;;  %v744_v55 = vmul.f32 %v3471_v61, %v3518_v29 }
 0x120   : > { %v1018_v6 = vpop.permute.xlu1 %1017  ;;  %v988_v7 = vpop.permute.xlu0 %987 }
 0x121   : > { %v1026_v16 = vadd.f32 %v1018_v6, %v1002_v4  ;;  %v3019_v44 = vpack.i.bf16 %v930_v5, %v929_v57  ;;  %v1033_v14 = vadd.f32 %v1029_v15, %v3627_v10  ;;  %v999_v21 = vadd.f32 %v988_v7, %v3575_v45 }
 0x122   : > { %v746_v15 = vmul.f32 %v3471_v61, %v3455_v54 }
 0x123   : > { %v1030_v40 = vmul.f32 %v1026_v16, %v3625_v9  ;;  %3020 = vrot.lane.b32.xlu1 %v3019_v44, %s4586_s20  ;;  %663 = vrot.lane.b32.xlu0 %v653_v41, %s4586_s20  ;;  %v1037_v45 = vmax.f32 %v1033_v14, 0.0 }
 0x124   : > { %v990_v42 = vpop.permute.xlu1 %989  ;;  %v1012_v22 = vpop.permute.xlu0 %1011 }
 0x125   : > { %v1034_v23 = vadd.f32 %v1030_v40, %v3629_v43  ;;  %v1023_v24 = vadd.f32 %v1012_v22, %v999_v21  ;;  %v1000_v26 = vadd.f32 %v990_v42, %v3577_v46 }
 0x127   : > { %v1027_v27 = vmul.f32 %v1023_v24, %v3631_v12  ;;  %612 = vrot.lane.b32.xlu1 %v603_v25, %s4586_s20  ;;  %610 = vrot.lane.b32.xlu0 %v602_v36, %s4586_s20  ;;  %v1038_v28 = vmax.f32 %v1034_v23, 0.0 }
 0x128   : > { %v1014_v37 = vpop.permute.xlu1 %1013  ;;  %v764_v38 = vpop.permute.xlu0 %763 }
 0x129   : > { %v1024_v52 = vadd.f32 %v1014_v37, %v1000_v26  ;;  %v3024_v47 = vpack.i.bf16 %v1038_v28, %v1037_v45  ;;  %v1031_v49 = vadd.f32 %v1027_v27, %v3635_v34  ;;  %v773_v1 = vadd.f32 %v764_v38, %v745_v0 }
 0x12a   : > { %v743_v26 = vmul.f32 %v3471_v61, %v3520_v33  ;;  %v3701_v0 = vand.u32 127, %v439_v30 }
 0x12b   : > { %v1028_v46 = vmul.f32 %v1024_v52, %v3633_v13  ;;  %661 = vrot.lane.b32.xlu1 %v652_v53, %s4586_s20  ;;  %659 = vrot.lane.b32.xlu0 %v651_v48, %s4586_s20  ;;  %v1035_v62 = vmax.f32 %v1031_v49, 0.0 }
 0x12c   : > { %v766_v59 = vpop.permute.xlu1 %765  ;;  %v788_v50 = vpop.permute.xlu0 %787  ;;  %4604 = vst [vmem:[#allocation8_spill] sm:$0xff] %v3701_v0 }
 0x12d   : > { %v1032_v60 = vadd.f32 %v1028_v46, %v3637_v11  ;;  %v797_v57 = vadd.f32 %v788_v50, %v773_v1  ;;  %v774_v5 = vadd.f32 %v766_v59, %v746_v15  ;;  %v443_v15 = vadd.s32 4294967292, %v3701_v0 }
 0x12f   : > { %3025 = vrot.lane.b32.xlu0 %v3024_v47, %s4586_s20  ;;  %v1036_v39 = vmax.f32 %v1032_v60, 0.0  ;;  %vm444_vm0 = vcmp.ge.s32.totalorder %v443_v15, 0  ;;  %vm445_vm1 = vcmp.lt.s32.totalorder %v443_v15, 4 }
 0x130   : > { %v790_v51 = vpop.permute.xlu1 %789  ;;  %v760_v56 = vpop.permute.xlu0 %759  ;;  %vm3707_vm2 = vmand %vm444_vm0, %vm445_vm1  ;;  %vm2505_vm0 = vcmask 27648  }
 0x131   : > { %v3029_v35 = vpack.i.bf16 %v1036_v39, %v1035_v62  ;;  %v798_v44 = vadd.f32 %v790_v51, %v774_v5  ;;  %v771_v28 = vadd.f32 %v760_v56, %v743_v26  ;;  %vm3844_vm4 = vmpackc.low %vm3707_vm2, %vm3707_vm2 }
 0x133   : > { %3030 = vrot.lane.b32.xlu1 %v3029_v35, %s4586_s20 }
 0x134   : > { %v762_v58 = vpop.permute.xlu1 %761  ;;  %v812_v63 = vpop.permute.xlu0 %811 }
 0x135   : > { %v821_v6 = vadd.f32 %v812_v63, %v797_v57  ;;  %v772_v23 = vadd.f32 %v762_v58, %v744_v55 }
 0x138   : > { %v814_v2 = vpop.permute.xlu1 %813  ;;  %v784_v4 = vpop.permute.xlu0 %783 }
 0x139   : > { %v822_v14 = vadd.f32 %v814_v2, %v798_v44  ;;  %v795_v48 = vadd.f32 %v784_v4, %v771_v28 }
 0x13c   : > { %v786_v7 = vpop.permute.xlu1 %785  ;;  %v836_v16 = vpop.permute.xlu0 %835 }
 0x13d   : > { %v845_v41 = vadd.f32 %v836_v16, %v821_v6  ;;  %v796_v27 = vadd.f32 %v786_v7, %v772_v23 }
 0x13f   : > { %v849_v40 = vmul.f32 %v845_v41, %v3623_v8 }
 0x140   : > { %v838_v21 = vpop.permute.xlu1 %837  ;;  %v810_v42 = vpop.permute.xlu0 %809 }
 0x141   : > { %v846_v22 = vadd.f32 %v838_v21, %v822_v14  ;;  %v853_v24 = vadd.f32 %v849_v40, %v3627_v10  ;;  %v820_v52 = vadd.f32 %v810_v42, %v796_v27 }
 0x143   : > { %v850_v54 = vmul.f32 %v846_v22, %v3625_v9  ;;  %v857_v37 = vmax.f32 %v853_v24, 0.0 }
 0x144   : > { %v564_v25 = vpop.permute.xlu0 %563  ;;  %v808_v36 = vpop.permute.xlu1 %807 }
 0x145   : > { %v854_v45 = vadd.f32 %v850_v54, %v3629_v43  ;;  %v819_v46 = vadd.f32 %v808_v36, %v795_v48  ;;  %v572_v1 = vadd.f32 %v564_v25, %v3497_v19  ;;  %v861_v25 = vsel %vm3707_vm2, %v857_v37, 0.0 }
 0x147   : > { %v858_v38 = vmax.f32 %v854_v45, 0.0 }
 0x148   : > { %v834_v53 = vpop.permute.xlu0 %833  ;;  %v562_v29 = vpop.permute.xlu1 %561 }
 0x149   : > { %v844_v47 = vadd.f32 %v834_v53, %v820_v52  ;;  %v3692_v49 = vpack.c.bf16 %v858_v38, %v857_v37  ;;  %v571_v7 = vadd.f32 %v562_v29, %v3499_v20 }
 0x14b   : > { %v848_v59 = vmul.f32 %v844_v47, %v3633_v13 }
 0x14c   : > { %v832_v50 = vpop.permute.xlu1 %831  ;;  %v615_v63 = vpop.permute.xlu0 %614 }
 0x14d   : > { %v843_v60 = vadd.f32 %v832_v50, %v819_v46  ;;  %v852_v61 = vadd.f32 %v848_v59, %v3637_v11  ;;  %v624_v19 = vadd.f32 %v615_v63, %v571_v7 }
 0x14f   : > { %v847_v33 = vmul.f32 %v843_v60, %v3631_v12  ;;  %v856_v39 = vmax.f32 %v852_v61, 0.0 }
 0x150   : > { %v617_v35 = vpop.permute.xlu1 %616  ;;  %v558_v57 = vpop.permute.xlu0 %557 }
 0x151   : > { %v851_v62 = vadd.f32 %v847_v33, %v3635_v34  ;;  %v625_v4 = vadd.f32 %v617_v35, %v572_v1 }
 0x153   : > { %v855_v51 = vmax.f32 %v851_v62, 0.0 }
 0x154   : > { %v560_v58 = vpop.permute.xlu1 %559 }
 0x155   : > { %v3698_v56 = vpack.c.bf16 %v856_v39, %v855_v51  ;;  %v570_v29 = vadd.f32 %v560_v58, %v3560_v18 }
 0x158   : > { %v666_v2 = vpop.permute.xlu1 %665 }
 0x159   : > { %v674_v5 = vadd.f32 %v666_v2, %v625_v4 }
 0x15b   : > { %v702_v16 = vmul.f32 %v3625_v9, %v674_v5  ;;  %v862_v9 = vsel %vm3707_vm2, %v858_v38, 0.0 }
 0x15c   : > { %v864_v53 = vpack.c.bf16 %v862_v9, %v861_v25  ;;  %v1225_v9 = vld [vmem:[%s4575_s5 + $0x20] sm:$0xff]  ;;  %v1226_v25 = vld [vmem:[%s4575_s5 + $0x28] sm:$0xff] }
 0x15d   : > { %v730_v22 = vadd.f32 %v3629_v43, %v702_v16  ;;  %v569_v43 = vadd.f32 %v558_v57, %v3558_v17  ;;  %v860_v17 = vsel %vm3707_vm2, %v856_v39, 0.0 }
 0x15f   : > { %v734_v48 = vmax.f32 %v730_v22, 0.0  ;;  %v1228_v22 = vld [vmem:[%s4575_s5 + $0x38] sm:$0xff] }
 0x161   : > { %v740_v62 = vsel %vm3707_vm2, %v734_v48, 0.0 }
 0x191   : > { %v3016_v6 = vpop.permute.xlu0 %3015 }
 0x192   : > { %v3018_v44 = vunpack.i.h.bf16 %v3016_v6  ;;  %v3017_v41 = vunpack.i.l.bf16 %v3016_v6 }
 0x194   : > { %v3711_v14 = vpack.c.bf16 %v3018_v44, %v3017_v41  ;;  %v951_v40 = vsel %vm3707_vm2, %v3017_v41, 0.0  ;;  %v952_v21 = vsel %vm3707_vm2, %v3018_v44, 0.0 }
 0x195   : > { %v3021_v42 = vpop.permute.xlu1 %3020  ;;  %v664_v55 = vpop.permute.xlu0 %663  ;;  %v954_v20 = vpack.c.bf16 %v952_v21, %v951_v40  ;;  %v1227_v40 = vld [vmem:[%s4575_s5 + $0x30] sm:$0xff] }
 0x196   : > { %v3023_v23 = vunpack.i.h.bf16 %v3021_v42  ;;  %v3022_v24 = vunpack.i.l.bf16 %v3021_v42  ;;  %v673_v54 = vadd.f32 %v664_v55, %v624_v19  ;;  %v1283_v55 = vld [vmem:[%s4576_s6 + $0x30] sm:$0xff] }
 0x197   : > { %1095 = vrot.lane.b32.xlu0 %v954_v20, %s4586_s20 }
 0x198   : > { %v3723_v36 = vpack.c.bf16 %v3023_v23, %v3022_v24  ;;  %v701_v26 = vmul.f32 %v3623_v8, %v673_v54  ;;  %v949_v27 = vsel %vm3707_vm2, %v3022_v24, 0.0  ;;  %v950_v45 = vsel %vm3707_vm2, %v3023_v23, 0.0  ;;  %v1281_v23 = vld [vmem:[%s4576_s6 + $0x20] sm:$0xff]  ;;  %v1284_v24 = vld [vmem:[%s4576_s6 + $0x38] sm:$0xff]  ;;  %v1223_v54 = vld [vmem:[%s4575_s5 + $0x10] sm:$0xff] }
 0x199   : > { %v613_v28 = vpop.permute.xlu1 %612  ;;  %v611_v38 = vpop.permute.xlu0 %610  ;;  %v953_v52 = vpack.c.bf16 %v950_v45, %v949_v27  ;;  %v859_v8 = vsel %vm3707_vm2, %v855_v51, 0.0  ;;  %v1279_v27 = vld [vmem:[%s4576_s6 + $0x10] sm:$0xff]  ;;  %v1282_v45 = vld [vmem:[%s4576_s6 + $0x28] sm:$0xff] }
 0x19a   : > { %v729_v37 = vadd.f32 %v3627_v10, %v701_v26  ;;  %v623_v46 = vadd.f32 %v613_v28, %v570_v29  ;;  %v622_v59 = vadd.f32 %v611_v38, %v569_v43  ;;  %v863_v61 = vpack.c.bf16 %v860_v17, %v859_v8  ;;  %v3036_v26 = vld [vmem:[%s4574_s4 + $0x4] ss:$8 sps:$4 sm:$0xff]   ;;  %v1224_v28 = vld [vmem:[%s4575_s5 + $0x18] sm:$0xff] }
 0x19b   : > { %1093 = vrot.lane.b32.xlu1 %v953_v52, %s4586_s20  ;;  %1087 = vrot.lane.b32.xlu0 %v864_v53, %s4586_s20  ;;  %v1221_v43 = vld [vmem:[%s4575_s5] sm:$0xff]  ;;  %v1280_v52 = vld [vmem:[%s4576_s6 + $0x18] sm:$0xff] }
 0x19c   : > { %v733_v47 = vmax.f32 %v729_v37, 0.0  ;;  %2652 = vmatprep.mubr.msk.bf16.mxu1 %vm1143_vm3, %v3036_v26  ;;  %2642 = vmatprep.mubr.msk.bf16.mxu0 %vm1143_vm3, %v3036_v26  ;;  %v1277_v38 = vld [vmem:[%s4576_s6] sm:$0xff]  ;;  %v1278_v29 = vld [vmem:[%s4576_s6 + $0x8] sm:$0xff] }
 0x19d   : > { %v662_v50 = vpop.permute.xlu1 %661  ;;  %v660_v60 = vpop.permute.xlu0 %659 }
 0x19e   : > { %v672_v18 = vadd.f32 %v662_v50, %v623_v46  ;;  %v671_v33 = vadd.f32 %v660_v60, %v622_v59  ;;  %v739_v10 = vsel %vm3707_vm2, %v733_v47, 0.0 }
 0x19f   : > { %1085 = vrot.lane.b32.xlu1 %v863_v61, %s4586_s20  ;;  %v742_v51 = vpack.c.bf16 %v740_v62, %v739_v10  ;;  %v3042_v10 = vld [vmem:[%s4574_s4 + $0x20] ss:$8 sps:$4 sm:$0xff]   ;;  %v3043_v62 = vld [vmem:[%s4574_s4 + $0x34] ss:$8 sps:$4 sm:$0xff]  }
 0x1a0   : > { %v700_v35 = vmul.f32 %v3633_v13, %v672_v18  ;;  %v699_v58 = vmul.f32 %v3631_v12, %v671_v33  ;;  %v3039_v18 = vld [vmem:[%s4574_s4 + $0x10] ss:$8 sps:$4 sm:$0xff]   ;;  %v3040_v33 = vld [vmem:[%s4574_s4 + $0x24] ss:$8 sps:$4 sm:$0xff]  }
 0x1a1   : > { %v3026_v63 = vpop.permute.xlu0 %3025  ;;  %1079 = vrot.lane.b32.xlu0 %v742_v51, %s4586_s20 }
 0x1a2   : > { %v728_v39 = vadd.f32 %v3637_v11, %v700_v35  ;;  %v727_v1 = vadd.f32 %v3635_v34, %v699_v58  ;;  %v3028_v2 = vunpack.i.h.bf16 %v3026_v63  ;;  %v3027_v4 = vunpack.i.l.bf16 %v3026_v63 }
 0x1a4   : > { %v732_v15 = vmax.f32 %v728_v39, 0.0  ;;  %v731_v57 = vmax.f32 %v727_v1, 0.0  ;;  %v3749_v5 = vpack.c.bf16 %v3028_v2, %v3027_v4  ;;  %v1057_v44 = vsel %vm3707_vm2, %v3027_v4, 0.0 }
 0x1a5   : > { %v3031_v6 = vpop.permute.xlu1 %3030  ;;  %1363 = vrot.lane.b32.xlu0 %v864_v53, %s4584_s21  ;;  %v1058_v41 = vsel %vm3707_vm2, %v3028_v2, 0.0  ;;  %v1222_v53 = vld [vmem:[%s4575_s5 + $0x8] sm:$0xff] }
 0x1a6   : > { %v3033_v13 = vunpack.i.h.bf16 %v3031_v6  ;;  %v3032_v7 = vunpack.i.l.bf16 %v3031_v6  ;;  %v737_v12 = vsel %vm3707_vm2, %v731_v57, 0.0  ;;  %v738_v11 = vsel %vm3707_vm2, %v732_v15, 0.0 }
 0x1a7   : > { %v741_v16 = vpack.c.bf16 %v738_v11, %v737_v12  ;;  %v1060_v19 = vpack.c.bf16 %v1058_v41, %v1057_v44 }
 0x1a8   : > { %v3756_v34 = vpack.c.bf16 %v3033_v13, %v3032_v7  ;;  %v1056_v21 = vsel %vm3707_vm2, %v3033_v13, 0.0  ;;  %v1055_v42 = vsel %vm3707_vm2, %v3032_v7, 0.0 }
 0x1a9   : > { %1357 = vrot.lane.b32.xlu0 %v742_v51, %s4584_s21  ;;  %1077 = vrot.lane.b32.xlu1 %v741_v16, %s4586_s20  ;;  %v1059_v20 = vpack.c.bf16 %v1056_v21, %v1055_v42 }
 0x1ad   : > { %1103 = vrot.lane.b32.xlu0 %v1060_v19, %s4586_s20  ;;  %1361 = vrot.lane.b32.xlu1 %v863_v61, %s4584_s21  ;;  %v3037_v61 = vld [vmem:[%s4574_s4 + $0x14] ss:$8 sps:$4 sm:$0xff]  }
 0x1b1   : > { %1261 = vperm.xlu0 %3012, %v1227_v40   ;;  %1355 = vrot.lane.b32.xlu1 %v741_v16, %s4584_s21 }
 0x1b5   : > { %1317 = vperm.xlu0 %3012, %v1283_v55   ;;  %1101 = vrot.lane.b32.xlu1 %v1059_v20, %s4586_s20 }
 0x1b9   : > { %1251 = vperm.xlu0 %3012, %v1225_v9   ;;  %1266 = vperm.xlu1 %3013, %v1228_v22  }
 0x1bd   : > { %1307 = vperm.xlu0 %3012, %v1281_v23   ;;  %1322 = vperm.xlu1 %3013, %v1284_v24  }
 0x1c1   : > { %1241 = vperm.xlu0 %3012, %v1223_v54   ;;  %1256 = vperm.xlu1 %3013, %v1226_v25  }
 0x1c5   : > { %1297 = vperm.xlu0 %3012, %v1279_v27   ;;  %1312 = vperm.xlu1 %3013, %v1282_v45  }
 0x1c9   : > { %1231 = vperm.xlu0 %3012, %v1221_v43   ;;  %1246 = vperm.xlu1 %3013, %v1224_v28  }
 0x1cd   : > { %1287 = vperm.xlu0 %3012, %v1277_v38   ;;  %1302 = vperm.xlu1 %3013, %v1280_v52  }
 0x1d1   : > { %1236 = vperm.xlu1 %3013, %v1222_v53  }
 0x1d5   : > { %1292 = vperm.xlu1 %3013, %v1278_v29  }
 0x209   : > { %v1096_v48 = vpop.permute.xlu0 %1095 }
 0x20a   : > { %1368 = vmatpush1.bf16.msra.mxu1 %v1096_v48 }
 0x20b   : > { %1369 = vmatprep.subr.bf16.mxu1 %v3180_v3 }
 0x20d   : > { %v3826_v37 = vpop.permute.xlu1 %1093  ;;  %v3829_v8 = vpop.permute.xlu0 %1087 }
 0x20e   : > { %1370 = vmatpush1.bf16.msra.mxu1 %v3826_v37 }
 0x20f   : > { %1371 = vmatprep.subr.bf16.mxu1 %v3180_v3 }
 0x211   : > { %v3834_v46 = vpop.permute.xlu1 %1085 }
 0x212   : > { %1372 = vmatpush1.bf16.msra.mxu1 %v3829_v8 }
 0x213   : > { %v1080_v47 = vpop.permute.xlu0 %1079  ;;  %1373 = vmatprep.subr.bf16.mxu1 %v3180_v3 }
 0x214   : > { %1157 = vmatpush1.bf16.msra.mxu0 %v1080_v47 }
 0x215   : > { %1158 = vmatprep.subr.bf16.mxu0 %v3180_v3 }
 0x216   : > { %1374 = vmatpush1.bf16.msra.mxu1 %v3834_v46 }
 0x217   : > { %1375 = vmatprep.subr.bf16.mxu1 %v3180_v3  ;;  %v1364_v30 = vpop.permute.xlu0 %1363 }
 0x21a   : > { %1376 = vmatpush1.bf16.msra.mxu1 %v1080_v47  ;;  %v1063_v47 = vadd.s32 4294967293, %v3701_v0 }
 0x21b   : > { %v1078_v59 = vpop.permute.xlu1 %1077  ;;  %1377 = vmatprep.subr.bf16.mxu1 %v3180_v3 }
 0x21c   : > { %1159 = vmatpush1.bf16.msra.mxu0 %v1078_v59  ;;  %vm1064_vm5 = vcmp.ge.s32.totalorder %v1063_v47, 0  ;;  %vm1065_vm6 = vcmp.lt.s32.totalorder %v1063_v47, 4 }
 0x21d   : > { %1160 = vmatprep.subr.bf16.mxu0 %v3180_v3  ;;  %vm3975_vm7 = vmand %vm1064_vm5, %vm1065_vm6 }
 0x21e   : > { %1378 = vmatpush1.bf16.msra.mxu1 %v1078_v59  ;;  %vm4180_vm8 = vmpackc.low %vm3975_vm7, %vm3975_vm7 }
 0x21f   : > { %1379 = vmatprep.subr.bf16.mxu1 %v3180_v3  ;;  %v1362_v50 = vpop.permute.xlu1 %1361 }
 0x220   : > { %2626 = vmatpush1.bf16.msk.msra.mxu0 %vm3844_vm4, %v3749_v5 }
 0x221   : > { %1162 = vmatprep.subr.bf16.mxu0 %v3180_v3 }
 0x222   : > { %2648 = vmatpush1.bf16.msk.msra.mxu1 %vm3844_vm4, %v3749_v5 }
 0x223   : > { %1381 = vmatprep.subr.bf16.mxu1 %v3180_v3 }
 0x224   : > { %2629 = vmatpush1.bf16.msk.msra.mxu0 %vm3844_vm4, %v3756_v34 }
 0x225   : > { %1164 = vmatprep.subr.bf16.mxu0 %v3180_v3 }
 0x226   : > { %2651 = vmatpush1.bf16.msk.msra.mxu1 %vm3844_vm4, %v3756_v34 }
 0x227   : > { %1387 = vmatprep.subr.bf16.mxu1 %v3180_v3 }
 0x228   : > { %2632 = vmatpush1.bf16.msk.msra.mxu0 %vm3844_vm4, %v3711_v14  ;;  %v1358_v14 = vpop.permute.xlu0 %1357 }
 0x229   : > { %1166 = vmatprep.subr.bf16.mxu0 %v3180_v3 }
 0x22a   : > { %1388 = vmatpush2.bf16.msra.mxu1 %v1364_v30 }
 0x22b   : > { %1389 = vmatprep.subr.bf16.mxu1 %v3180_v3 }
 0x22c   : > { %2635 = vmatpush1.bf16.msk.msra.mxu0 %vm3844_vm4, %v3723_v36  ;;  %v1356_v36 = vpop.permute.xlu1 %1355  ;;  %v1104_v60 = vpop.permute.xlu0 %1103 }
 0x22d   : > { %1168 = vmatprep.subr.bf16.mxu0 %v3180_v3 }
 0x22e   : > { %1390 = vmatpush2.bf16.msra.mxu1 %v1362_v50 }
 0x22f   : > { %1391 = vmatprep.subr.bf16.mxu1 %v3180_v3 }
 0x230   : > { %2638 = vmatpush1.bf16.msk.msra.mxu0 %vm3844_vm4, %v3692_v49  ;;  %v1102_v49 = vpop.permute.xlu1 %1101  ;;  %v3921_v51 = vpop.permute.xlu0 %1261 }
 0x231   : > { %1170 = vmatprep.subr.bf16.mxu0 %v3180_v3 }
 0x232   : > { %1392 = vmatpush2.bf16.msra.mxu1 %v1358_v14 }
 0x233   : > { %1393 = vmatprep.subr.bf16.mxu1 %v3180_v3 }
 0x234   : > { %2641 = vmatpush1.bf16.msk.msra.mxu0 %vm3844_vm4, %v3698_v56  ;;  %v3034_v56 = vld [vmem:[%s4574_s4] ss:$8 sps:$4 sm:$0xff]   ;;  %v3923_v35 = vpop.permute.xlu1 %1266  ;;  %v3925_v58 = vpop.permute.xlu0 %1317 }
 0x235   : > { %1176 = vmatprep.subr.bf16.mxu0 %v3180_v3 }
 0x236   : > { %1394 = vmatpush2.bf16.msra.mxu1 %v1356_v36 }
 0x237   : > { %1395 = vmatprep.subr.bf16.mxu1 %v3180_v3 }
 0x238   : > { %1177 = vmatpush2.bf16.msra.mxu0 %v1104_v60  ;;  %v3927_v63 = vpop.permute.xlu1 %1322  ;;  %v3929_v39 = vpop.permute.xlu0 %1251 }
 0x239   : > { %1178 = vmatprep.subr.bf16.mxu0 %v3180_v3 }
 0x23a   : > { %1396 = vmatpush2.bf16.msra.mxu1 %v1104_v60 }
 0x23b   : > { %1397 = vmatprep.subr.bf16.mxu1 %v3180_v3 }
 0x23c   : > { %1179 = vmatpush2.bf16.msra.mxu0 %v1102_v49  ;;  %v3931_v1 = vpop.permute.xlu1 %1256  ;;  %v3933_v2 = vpop.permute.xlu0 %1307 }
 0x23d   : > { %1180 = vmatprep.subr.bf16.mxu0 %v3180_v3 }
 0x23e   : > { %1398 = vmatpush2.bf16.msra.mxu1 %v1102_v49 }
 0x240   : > { %1181 = vmatpush2.bf16.msra.mxu0 %v1096_v48  ;;  %v3935_v4 = vpop.permute.xlu1 %1312  ;;  %v1242_v15 = vpop.permute.xlu0 %1241 }
 0x241   : > { %1400 = vmatmul.mubr.bf16.vlgmr.msra.gmra.mxu1 %v3034_v56  ;;  %1182 = vmatprep.subr.bf16.mxu0 %v3180_v3 }
 0x242   : > { %2653 = vmatprep.mubr.msk.bf16.mxu1 %vm1143_vm3, %v3037_v61 }
 0x244   : > { %1183 = vmatpush2.bf16.msra.mxu0 %v3826_v37  ;;  %v3937_v57 = vpop.permute.xlu1 %1246  ;;  %v3939_v5 = vpop.permute.xlu0 %1297 }
 0x245   : > { %1184 = vmatprep.subr.bf16.mxu0 %v3180_v3 }
 0x248   : > { %1185 = vmatpush2.bf16.msra.mxu0 %v3829_v8  ;;  %v3941_v6 = vpop.permute.xlu1 %1302  ;;  %v1232_v13 = vpop.permute.xlu0 %1231 }
 0x249   : > { %1408 = vmatmul.mubr.bf16.gmra.mxu1 %v3039_v18  ;;  %1186 = vmatprep.subr.bf16.mxu0 %v3180_v3  ;;  %v3045_v3 = vld [vmem:[%s4574_s4 + $0x30] ss:$8 sps:$4 sm:$0xff]  }
 0x24a   : > { %2654 = vmatprep.mubr.msk.bf16.mxu1 %vm1143_vm3, %v3040_v33 }
 0x24c   : > { %1187 = vmatpush2.bf16.msra.mxu0 %v3834_v46  ;;  %v1237_v7 = vpop.permute.xlu1 %1236  ;;  %v1288_v34 = vpop.permute.xlu0 %1287 }
 0x24f   : > { %1189 = vmatmul.mubr.bf16.vlgmr.msra.gmra.mxu0 %v3034_v56 }
 0x250   : > { %2643 = vmatprep.mubr.msk.bf16.mxu0 %vm1143_vm3, %v3037_v61  ;;  %v1293_v40 = vpop.permute.xlu1 %1292 }
 0x251   : > { %1416 = vmatmul.mubr.bf16.gmra.mxu1 %v3042_v10 }
 0x252   : > { %2655 = vmatprep.mubr.msk.bf16.mxu1 %vm1143_vm3, %v3043_v62 }
 0x257   : > { %1197 = vmatmul.mubr.bf16.gmra.mxu0 %v3039_v18 }
 0x258   : > { %2644 = vmatprep.mubr.msk.bf16.mxu0 %vm1143_vm3, %v3040_v33 }
 0x259   : > { %1424 = vmatmul.mubr.bf16.gmra.mxu1 %v3045_v3 }
 0x25f   : > { %1205 = vmatmul.mubr.bf16.gmra.mxu0 %v3042_v10 }
 0x260   : > { %2645 = vmatprep.mubr.msk.bf16.mxu0 %vm1143_vm3, %v3043_v62 }
 0x267   : > { %1213 = vmatmul.mubr.bf16.gmra.mxu0 %v3045_v3 }
 0x301   : > { %v1401_v12 = vpop.f32.mrf.mxu1 }
 0x302   : > { %v1432_v11 = vmul.f32 %v1401_v12, %v1232_v13 }
 0x303   : > { %v1403_v16 = vpop.f32.mrf.mxu1 }
 0x304   : > { %v3943_v41 = vadd.f32 %v1432_v11, %v1288_v34  ;;  %v2237_v11 = vld [vmem:[%s4579_s9 + $0x8] sm:$0xff] }
 0x305   : > { %v1404_v44 = vpop.f32.mrf.mxu1 }
 0x306   : > { %v1433_v19 = vmul.f32 %v1404_v44, %v1237_v7  ;;  %v1448_v20 = vmax.f32 %v3943_v41, 0.0 }
 0x307   : > { %v1406_v21 = vpop.f32.mrf.mxu1 }
 0x308   : > { %v1441_v42 = vadd.f32 %v1433_v19, %v1293_v40 }
 0x309   : > { %v1409_v55 = vpop.f32.mrf.mxu1 }
 0x30a   : > { %v1449_v9 = vmax.f32 %v1441_v42, 0.0  ;;  %v1434_v22 = vmul.f32 %v1409_v55, %v1242_v15 }
 0x30b   : > { %v1411_v23 = vpop.f32.mrf.mxu1 }
 0x30c   : > { %v3946_v24 = vpack.c.bf16 %v1449_v9, %v1448_v20  ;;  %v3949_v25 = vadd.f32 %v1434_v22, %v3939_v5 }
 0x30d   : > { %v1412_v54 = vpop.f32.mrf.mxu1 }
 0x30e   : > { %v1435_v26 = vmul.f32 %v1412_v54, %v3937_v57  ;;  %v1450_v53 = vmax.f32 %v3949_v25, 0.0  ;;  %v1457_v54 = vsel %vm3975_vm7, %v1449_v9, 0.0 }
 0x30f   : > { %v1190_v27 = vpop.f32.mrf.mxu0  ;;  %v1414_v45 = vpop.f32.mrf.mxu1 }
 0x310   : > { %v3953_v43 = vadd.f32 %v1435_v26, %v3941_v6  ;;  %v1269_v28 = vmul.f32 %v1232_v13, %v1190_v27 }
 0x311   : > { %v1192_v38 = vpop.f32.mrf.mxu0  ;;  %v1417_v52 = vpop.f32.mrf.mxu1 }
 0x312   : > { %v1451_v29 = vmax.f32 %v3953_v43, 0.0  ;;  %v1436_v48 = vmul.f32 %v1417_v52, %v3929_v39  ;;  %v3966_v17 = vadd.f32 %v1288_v34, %v1269_v28 }
 0x313   : > { %v1193_v37 = vpop.f32.mrf.mxu0  ;;  %v1419_v8 = vpop.f32.mrf.mxu1 }
 0x314   : > { %v3963_v46 = vpack.c.bf16 %v1451_v29, %v1450_v53  ;;  %v1444_v59 = vadd.f32 %v1436_v48, %v3933_v2  ;;  %v1270_v30 = vmul.f32 %v1237_v7, %v1193_v37  ;;  %v1333_v33 = vmax.f32 %v3966_v17, 0.0  ;;  %v3048_v17 = vld [vmem:[%s4577_s7 + $0x4] ss:$20 sps:$4 sm:$0xff]  }
 0x315   : > { %v1195_v50 = vpop.f32.mrf.mxu0  ;;  %v1420_v14 = vpop.f32.mrf.mxu1  ;;  %1865 = vmatprep.mubr.bf16.mxu0 %v3048_v17  ;;  %v3054_v17 = vld [vmem:[%s4577_s7 + $0x50] ss:$20 sps:$4 sm:$0xff]  }
 0x316   : > { %v1437_v36 = vmul.f32 %v1420_v14, %v3931_v1  ;;  %v3969_v60 = vadd.f32 %v1293_v40, %v1270_v30  ;;  %v1452_v61 = vmax.f32 %v1444_v59, 0.0 }
 0x317   : > { %v1198_v49 = vpop.f32.mrf.mxu0  ;;  %v1422_v56 = vpop.f32.mrf.mxu1 }
 0x318   : > { %v1445_v18 = vadd.f32 %v1437_v36, %v3935_v4  ;;  %v1334_v10 = vmax.f32 %v3969_v60, 0.0  ;;  %v1271_v62 = vmul.f32 %v1242_v15, %v1198_v49  ;;  %v1460_v15 = vsel %vm3975_vm7, %v1452_v61, 0.0 }
 0x319   : > { %v1200_v3 = vpop.f32.mrf.mxu0  ;;  %v1425_v13 = vpop.f32.mrf.mxu1 }
 0x31a   : > { %v1453_v7 = vmax.f32 %v1445_v18, 0.0  ;;  %v1438_v12 = vmul.f32 %v1425_v13, %v3921_v51  ;;  %v3983_v16 = vpack.c.bf16 %v1334_v10, %v1333_v33  ;;  %v3994_v21 = vadd.f32 %v3939_v5, %v1271_v62 }
 0x31b   : > { %v1201_v34 = vpop.f32.mrf.mxu0  ;;  %v1427_v44 = vpop.f32.mrf.mxu1  ;;  %v1456_v5 = vsel %vm3975_vm7, %v1448_v20, 0.0  ;;  %v1458_v62 = vsel %vm3975_vm7, %v1450_v53, 0.0 }
 0x31c   : > { %v1461_v41 = vsel %vm3975_vm7, %v1453_v7, 0.0  ;;  %v3989_v19 = vpack.c.bf16 %v1453_v7, %v1452_v61  ;;  %v1446_v42 = vadd.f32 %v1438_v12, %v3925_v58  ;;  %v1272_v55 = vmul.f32 %v3937_v57, %v1201_v34 }
 0x31d   : > { %v3991_v40 = vpack.c.bf16 %v1461_v41, %v1460_v15  ;;  %v1203_v22 = vpop.f32.mrf.mxu0  ;;  %v1428_v23 = vpop.f32.mrf.mxu1  ;;  %v1464_v48 = vpack.c.bf16 %v1457_v54, %v1456_v5  ;;  %v1335_v9 = vmax.f32 %v3994_v21, 0.0  ;;  %v1344_v41 = vsel %vm3975_vm7, %v1334_v10, 0.0  ;;  %v2137_v54 = vld [vmem:[%s4578_s8 + $0x68] sm:$0xff]  ;;  %v2250_v5 = vld [vmem:[%s4579_s9 + $0x70] sm:$0xff] }
 0x31e   : > { %v1439_v26 = vmul.f32 %v1428_v23, %v3923_v35  ;;  %v1328_v27 = vadd.f32 %v3941_v6, %v1272_v55  ;;  %v1454_v38 = vmax.f32 %v1446_v42, 0.0 }
 0x31f   : > { %v1206_v45 = vpop.f32.mrf.mxu0  ;;  %v1430_v28 = vpop.f32.mrf.mxu1  ;;  %1540 = vrot.lane.b32.xlu1 %v3991_v40, %s4611_s22  ;;  %v1345_v22 = vsel %vm3975_vm7, %v1335_v9, 0.0 }
 0x320   : > { %v1447_v57 = vadd.f32 %v1439_v26, %v3927_v63  ;;  %v1273_v52 = vmul.f32 %v3929_v39, %v1206_v45  ;;  %v1336_v37 = vmax.f32 %v1328_v27, 0.0  ;;  %v1462_v20 = vsel %vm3975_vm7, %v1454_v38, 0.0  ;;  %v2139_v26 = vld [vmem:[%s4578_s8 + $0x78] sm:$0xff]  ;;  %v2136_v27 = vld [vmem:[%s4578_s8 + $0x60] sm:$0xff] }
 0x321   : > { %v1208_v8 = vpop.f32.mrf.mxu0  ;;  %v2251_v45 = vld [vmem:[%s4579_s9 + $0x78] sm:$0xff] }
 0x322   : > { %v1455_v47 = vmax.f32 %v1447_v57, 0.0  ;;  %v4009_v6 = vpack.c.bf16 %v1336_v37, %v1335_v9  ;;  %v1329_v59 = vadd.f32 %v3933_v2, %v1273_v52  ;;  %v1459_v2 = vsel %vm3975_vm7, %v1451_v29, 0.0  ;;  %v2135_v28 = vld [vmem:[%s4578_s8 + $0x58] sm:$0xff]  ;;  %v2249_v57 = vld [vmem:[%s4579_s9 + $0x68] sm:$0xff]  ;;  %v2132_v9 = vld [vmem:[%s4578_s8 + $0x40] sm:$0xff] }
 0x323   : > { %v1209_v30 = vpop.f32.mrf.mxu0  ;;  %1536 = vrot.lane.b32.xlu1 %v1464_v48, %s4611_s22  ;;  %v1346_v10 = vsel %vm3975_vm7, %v1336_v37, 0.0  ;;  %v2133_v52 = vld [vmem:[%s4578_s8 + $0x48] sm:$0xff]  ;;  %v2247_v37 = vld [vmem:[%s4579_s9 + $0x58] sm:$0xff] }
 0x324   : > { %v1463_v50 = vsel %vm3975_vm7, %v1455_v47, 0.0  ;;  %v4017_v39 = vpack.c.bf16 %v1455_v47, %v1454_v38  ;;  %v1274_v36 = vmul.f32 %v3931_v1, %v1209_v30  ;;  %v1337_v56 = vmax.f32 %v1329_v59, 0.0  ;;  %v2134_v38 = vld [vmem:[%s4578_s8 + $0x50] sm:$0xff]  ;;  %v2131_v8 = vld [vmem:[%s4578_s8 + $0x38] sm:$0xff]  ;;  %v2245_v30 = vld [vmem:[%s4579_s9 + $0x48] sm:$0xff] }
 0x325   : > { %v1467_v14 = vpack.c.bf16 %v1463_v50, %v1462_v20  ;;  %v1211_v49 = vpop.f32.mrf.mxu0  ;;  %v1465_v1 = vpack.c.bf16 %v1459_v2, %v1458_v62  ;;  %v1352_v23 = vpack.c.bf16 %v1346_v10, %v1345_v22  ;;  %v2246_v47 = vld [vmem:[%s4579_s9 + $0x50] sm:$0xff]  ;;  %v2129_v20 = vld [vmem:[%s4578_s8 + $0x28] sm:$0xff]  ;;  %v2244_v50 = vld [vmem:[%s4579_s9 + $0x40] sm:$0xff] }
 0x326   : > { %v1330_v61 = vadd.f32 %v3935_v4, %v1274_v36  ;;  %v1347_v29 = vsel %vm3975_vm7, %v1337_v56, 0.0  ;;  %v2130_v59 = vld [vmem:[%s4578_s8 + $0x30] sm:$0xff]  ;;  %v2243_v36 = vld [vmem:[%s4579_s9 + $0x38] sm:$0xff]  ;;  %v2240_v62 = vld [vmem:[%s4579_s9 + $0x20] sm:$0xff] }
 0x327   : > { %v1214_v18 = vpop.f32.mrf.mxu0  ;;  %1542 = vrot.lane.b32.xlu0 %v1467_v14, %s4611_s22  ;;  %v2127_v49 = vld [vmem:[%s4578_s8 + $0x18] sm:$0xff]  ;;  %v2242_v2 = vld [vmem:[%s4579_s9 + $0x30] sm:$0xff] }
 0x328   : > { %v1275_v3 = vmul.f32 %v3921_v51, %v1214_v18  ;;  %v1338_v13 = vmax.f32 %v1330_v61, 0.0  ;;  %v2241_v61 = vld [vmem:[%s4579_s9 + $0x28] sm:$0xff] }
 0x329   : > { %v1216_v7 = vpop.f32.mrf.mxu0  ;;  %v2125_v18 = vld [vmem:[%s4578_s8 + $0x8] sm:$0xff] }
 0x32a   : > { %v1331_v43 = vadd.f32 %v3925_v58, %v1275_v3  ;;  %v1348_v4 = vsel %vm3975_vm7, %v1338_v13, 0.0  ;;  %v4036_v12 = vpack.c.bf16 %v1338_v13, %v1337_v56  ;;  %v2126_v56 = vld [vmem:[%s4578_s8 + $0x10] sm:$0xff]  ;;  %v2124_v3 = vld [vmem:[%s4578_s8] sm:$0xff]  ;;  %v2239_v13 = vld [vmem:[%s4579_s9 + $0x18] sm:$0xff] }
 0x32b   : > { %v1217_v34 = vpop.f32.mrf.mxu0  ;;  %1538 = vrot.lane.b32.xlu0 %v1465_v1, %s4611_s22  ;;  %v1353_v25 = vpack.c.bf16 %v1348_v4, %v1347_v29  ;;  %v2236_v7 = vld [vmem:[%s4579_s9] sm:$0xff]  ;;  %v2238_v4 = vld [vmem:[%s4579_s9 + $0x10] sm:$0xff] }
 0x32c   : > { %v1276_v53 = vmul.f32 %v3923_v35, %v1217_v34  ;;  %v1339_v44 = vmax.f32 %v1331_v43, 0.0  ;;  %v1343_v35 = vsel %vm3975_vm7, %v1333_v33, 0.0  ;;  %v3057_v33 = vld [vmem:[%s4577_s7 + $0xc] ss:$20 sps:$4 sm:$0xff]  }
 0x32d   : > { %v1219_v51 = vpop.f32.mrf.mxu0  ;;  %1524 = vrot.lane.b32.xlu1 %v1353_v25, %s4611_s22  ;;  %v1351_v60 = vpack.c.bf16 %v1344_v41, %v1343_v35  ;;  %1962 = vmatprep.mubr.bf16.mxu1 %v3057_v33  ;;  %v3092_v43 = vld [vmem:[%s4577_s7 + $0xf8] ss:$20 sps:$4 sm:$0xff]  }
 0x32e   : > { %v1332_v15 = vadd.f32 %v3927_v63, %v1276_v53  ;;  %v1349_v21 = vsel %vm3975_vm7, %v1339_v44, 0.0  ;;  %v2365_v51 = vld [vmem:[#allocation2] sm:$0x1] }
 0x330   : > { %v1340_v58 = vmax.f32 %v1332_v15, 0.0 }
 0x331   : > { %1590 = vrot.lane.b32.xlu1 %v1467_v14, %s3183_s11 }
 0x332   : > { %v1350_v42 = vsel %vm3975_vm7, %v1340_v58, 0.0  ;;  %v4050_v55 = vpack.c.bf16 %v1340_v58, %v1339_v44 }
 0x333   : > { %v1354_v63 = vpack.c.bf16 %v1350_v42, %v1349_v21  ;;  %v3046_v42 = vld [vmem:[%s4577_s7] ss:$20 sps:$4 sm:$0xff]  }
 0x335   : > { %1526 = vrot.lane.b32.xlu0 %v1354_v63, %s4611_s22  ;;  %1520 = vrot.lane.b32.xlu1 %v1351_v60, %s4611_s22 }
 0x339   : > { %1522 = vrot.lane.b32.xlu0 %v1352_v23, %s4611_s22  ;;  %1564 = vrot.lane.b32.xlu1 %v3991_v40, %s4612_s29 }
 0x33d   : > { %1566 = vrot.lane.b32.xlu0 %v1467_v14, %s4612_s29  ;;  %1562 = vrot.lane.b32.xlu1 %v1465_v1, %s4612_s29  ;;  %v2128_v14 = vld [vmem:[%s4578_s8 + $0x20] sm:$0xff] }
 0x341   : > { %1588 = vrot.lane.b32.xlu0 %v3991_v40, %s3183_s11  ;;  %1560 = vrot.lane.b32.xlu1 %v1464_v48, %s4612_s29  ;;  %v2138_v40 = vld [vmem:[%s4578_s8 + $0x70] sm:$0xff] }
 0x345   : > { %1586 = vrot.lane.b32.xlu0 %v1465_v1, %s3183_s11  ;;  %1554 = vrot.lane.b32.xlu1 %v1354_v63, %s4612_s29 }
 0x349   : > { %1584 = vrot.lane.b32.xlu0 %v1464_v48, %s3183_s11  ;;  %1552 = vrot.lane.b32.xlu1 %v1353_v25, %s4612_s29  ;;  %v2248_v48 = vld [vmem:[%s4579_s9 + $0x60] sm:$0xff] }
 0x34d   : > { %1578 = vrot.lane.b32.xlu0 %v1354_v63, %s3183_s11  ;;  %1550 = vrot.lane.b32.xlu1 %v1352_v23, %s4612_s29 }
 0x351   : > { %1576 = vrot.lane.b32.xlu0 %v1353_v25, %s3183_s11  ;;  %1548 = vrot.lane.b32.xlu1 %v1351_v60, %s4612_s29 }
 0x355   : > { %1574 = vrot.lane.b32.xlu0 %v1352_v23, %s3183_s11  ;;  %1600 = vrot.lane.b32.xlu1 %v1353_v25, %s3184_s15 }
 0x359   : > { %1572 = vrot.lane.b32.xlu0 %v1351_v60, %s3183_s11  ;;  %1596 = vrot.lane.b32.xlu1 %v1351_v60, %s3184_s15 }
 0x35d   : > { %1602 = vrot.lane.b32.xlu0 %v1354_v63, %s3184_s15  ;;  %2212 = vperm.xlu1 %3013, %v2138_v40   ;;  %v3051_v63 = vld [vmem:[%s4577_s7 + $0x28] ss:$20 sps:$4 sm:$0xff]  }
 0x35e   : > { %v3058_v40 = vld [vmem:[%s4577_s7 + $0x7c] ss:$20 sps:$4 sm:$0xff]  }
 0x361   : > { %1598 = vrot.lane.b32.xlu0 %v1352_v23, %s3184_s15  ;;  %2207 = vperm.xlu1 %3013, %v2137_v54   ;;  %s2730_s15 = sshll.u32 %s3170_s26, 6  ;;  %s3188_s26 = smov [#allocation3]  }
 0x362   : > { %s4530_s0 = scalar_lea.hbm %s4582_s12, %s2730_s15  ;;  %s3106_s11 = sshll.u32 %s3188_s26, 4  ;;  %s3107_s11 = int_to_ptr.vmem [resolvable:$false] %s3106_s11 }
 0x363   : > { %s3108_s2 = scalar_lea.vmem %s3107_s11, 128 }
 0x365   : > { %2217 = vperm.xlu0 %3012, %v2139_v26   ;;  %2202 = vperm.xlu1 %3013, %v2136_v27   ;;  %v3055_v27 = vld [vmem:[%s4577_s7 + $0x8] ss:$20 sps:$4 sm:$0xff]  }
 0x369   : > { %2329 = vperm.xlu0 %3012, %v2251_v45   ;;  %2197 = vperm.xlu1 %3013, %v2135_v28   ;;  %v3061_v45 = vld [vmem:[%s4577_s7 + $0x34] ss:$20 sps:$4 sm:$0xff]   ;;  %v3060_v28 = vld [vmem:[%s4577_s7 + $0x78] ss:$20 sps:$4 sm:$0xff]  }
 0x36d   : > { %2324 = vperm.xlu0 %3012, %v2250_v5   ;;  %2192 = vperm.xlu1 %3013, %v2134_v38   ;;  %v3064_v38 = vld [vmem:[%s4577_s7 + $0xa4] ss:$20 sps:$4 sm:$0xff]  }
 0x371   : > { %2319 = vperm.xlu0 %3012, %v2249_v57   ;;  %2187 = vperm.xlu1 %3013, %v2133_v52   ;;  %v3063_v52 = vld [vmem:[%s4577_s7 + $0x30] ss:$20 sps:$4 sm:$0xff]  }
 0x375   : > { %2314 = vperm.xlu0 %3012, %v2248_v48   ;;  %2182 = vperm.xlu1 %3013, %v2132_v9   ;;  %v3067_v9 = vld [vmem:[%s4577_s7 + $0x5c] ss:$20 sps:$4 sm:$0xff]  }
 0x379   : > { %2309 = vperm.xlu0 %3012, %v2247_v37   ;;  %2177 = vperm.xlu1 %3013, %v2131_v8   ;;  %v3066_v37 = vld [vmem:[%s4577_s7 + $0xa0] ss:$20 sps:$4 sm:$0xff]  }
 0x37a   : > { %v3070_v8 = vld [vmem:[%s4577_s7 + $0xcc] ss:$20 sps:$4 sm:$0xff]  }
 0x37d   : > { %2304 = vperm.xlu0 %3012, %v2246_v47   ;;  %2172 = vperm.xlu1 %3013, %v2130_v59   ;;  %v3069_v59 = vld [vmem:[%s4577_s7 + $0x58] ss:$20 sps:$4 sm:$0xff]  }
 0x381   : > { %2299 = vperm.xlu0 %3012, %v2245_v30   ;;  %2167 = vperm.xlu1 %3013, %v2129_v20   ;;  %v3073_v30 = vld [vmem:[%s4577_s7 + $0x84] ss:$20 sps:$4 sm:$0xff]   ;;  %v3072_v20 = vld [vmem:[%s4577_s7 + $0xc8] ss:$20 sps:$4 sm:$0xff]  }
 0x385   : > { %2294 = vperm.xlu0 %3012, %v2244_v50   ;;  %2162 = vperm.xlu1 %3013, %v2128_v14   ;;  %v3076_v50 = vld [vmem:[%s4577_s7 + $0xf4] ss:$20 sps:$4 sm:$0xff]  }
 0x386   : > { %v3075_v14 = vld [vmem:[%s4577_s7 + $0x80] ss:$20 sps:$4 sm:$0xff]  }
 0x389   : > { %2289 = vperm.xlu0 %3012, %v2243_v36   ;;  %2157 = vperm.xlu1 %3013, %v2127_v49   ;;  %v3079_v36 = vld [vmem:[%s4577_s7 + $0xac] ss:$20 sps:$4 sm:$0xff]   ;;  %v3078_v49 = vld [vmem:[%s4577_s7 + $0xf0] ss:$20 sps:$4 sm:$0xff]  }
 0x38d   : > { %2284 = vperm.xlu0 %3012, %v2242_v2   ;;  %2152 = vperm.xlu1 %3013, %v2126_v56   ;;  %v3082_v2 = vld [vmem:[%s4577_s7 + $0x11c] ss:$20 sps:$4 sm:$0xff]  }
 0x38e   : > { %v3081_v56 = vld [vmem:[%s4577_s7 + $0xa8] ss:$20 sps:$4 sm:$0xff]  }
 0x391   : > { %2279 = vperm.xlu0 %3012, %v2241_v61   ;;  %2147 = vperm.xlu1 %3013, %v2125_v18   ;;  %v1541_v1 = vpop.permute.xlu1 %1540  ;;  %v3085_v61 = vld [vmem:[%s4577_s7 + $0xd4] ss:$20 sps:$4 sm:$0xff]   ;;  %v3084_v18 = vld [vmem:[%s4577_s7 + $0x118] ss:$20 sps:$4 sm:$0xff]  }
 0x395   : > { %2274 = vperm.xlu0 %3012, %v2240_v62   ;;  %2142 = vperm.xlu1 %3013, %v2124_v3   ;;  %v1537_v34 = vpop.permute.xlu1 %1536  ;;  %v3088_v62 = vld [vmem:[%s4577_s7 + $0x10] ss:$20 sps:$4 sm:$0xff]  }
 0x396   : > { %v3087_v3 = vld [vmem:[%s4577_s7 + $0xd0] ss:$20 sps:$4 sm:$0xff]  }
 0x399   : > { %v1543_v29 = vpop.permute.xlu0 %1542  ;;  %2269 = vperm.xlu0 %3012, %v2239_v13   ;;  %2254 = vperm.xlu1 %3013, %v2236_v7   ;;  %v3089_v13 = vld [vmem:[%s4577_s7 + $0x38] ss:$20 sps:$4 sm:$0xff]   ;;  %v3093_v7 = vld [vmem:[%s4577_s7 + $0x60] ss:$20 sps:$4 sm:$0xff]  }
 0x39a   : > { %2733 = vmatprep.subr.bf16.mxu0 %v1543_v29  ;;  %v3095_v29 = vld [vmem:[%s4577_s7 + $0x124] ss:$20 sps:$4 sm:$0xff]  }
 0x39b   : > { %2734 = vmatpush3.bf16.msk.msra.mxu0 %vm4180_vm8, %v4017_v39 }
 0x39c   : > { %2735 = vmatprep.subr.bf16.mxu0 %v1541_v1  ;;  %v3090_v1 = vld [vmem:[%s4577_s7 + $0xfc] ss:$20 sps:$4 sm:$0xff]  }
 0x39d   : > { %2264 = vperm.xlu0 %3012, %v2238_v4   ;;  %v1539_v25 = vpop.permute.xlu0 %1538  ;;  %v3094_v4 = vld [vmem:[%s4577_s7 + $0x88] ss:$20 sps:$4 sm:$0xff]  }
 0x39f   : > { %2736 = vmatpush3.bf16.msk.msra.mxu0 %vm4180_vm8, %v3989_v19  ;;  %v1525_v53 = vpop.permute.xlu1 %1524 }
 0x3a0   : > { %2737 = vmatprep.subr.bf16.mxu0 %v1539_v25  ;;  %v3099_v25 = vld [vmem:[%s4577_s7 + $0xd8] ss:$20 sps:$4 sm:$0xff]  }
 0x3a1   : > { %2259 = vperm.xlu0 %3012, %v2237_v11   ;;  %v3097_v11 = vld [vmem:[%s4577_s7 + $0x120] ss:$20 sps:$4 sm:$0xff]  }
 0x3a3   : > { %2738 = vmatpush3.bf16.msk.msra.mxu0 %vm4180_vm8, %v3963_v46  ;;  %v1591_v39 = vpop.permute.xlu1 %1590 }
 0x3a4   : > { %2739 = vmatprep.subr.bf16.mxu0 %v1537_v34  ;;  %2797 = vmatprep.subr.bf16.mxu1 %v1591_v39  ;;  %v3098_v34 = vld [vmem:[%s4577_s7 + $0xb0] ss:$20 sps:$4 sm:$0xff]   ;;  %v4589_v39 = vmov 0.0  }
 0x3a5   : > { %2368 = vperm.xlu0 %3012, %v2365_v51   ;;  %v3101_v51 = vld [vmem:[%s4577_s7 + $0x128] ss:$20 sps:$4 sm:$0xff]  }
 0x3a7   : > { %v1527_v44 = vpop.permute.xlu0 %1526  ;;  %2740 = vmatpush3.bf16.msk.msra.mxu0 %vm4180_vm8, %v3946_v24  ;;  %v1521_v15 = vpop.permute.xlu1 %1520 }
 0x3a8   : > { %2741 = vmatprep.subr.bf16.mxu0 %v1527_v44 }
 0x3ab   : > { %v1523_v19 = vpop.permute.xlu0 %1522  ;;  %2742 = vmatpush3.bf16.msk.msra.mxu0 %vm4180_vm8, %v4050_v55  ;;  %v1565_v58 = vpop.permute.xlu1 %1564 }
 0x3ac   : > { %2743 = vmatprep.subr.bf16.mxu0 %v1525_v53  ;;  %v3100_v53 = vld [vmem:[%s4577_s7 + $0x100] ss:$20 sps:$4 sm:$0xff]  }
 0x3af   : > { %v1567_v41 = vpop.permute.xlu0 %1566  ;;  %2744 = vmatpush3.bf16.msk.msra.mxu0 %vm4180_vm8, %v4036_v12  ;;  %v1563_v46 = vpop.permute.xlu1 %1562  ;;  %v3049_v12 = vld [vmem:[%s4577_s7 + $0x2c] ss:$20 sps:$4 sm:$0xff]  }
 0x3b0   : > { %2745 = vmatprep.subr.bf16.mxu0 %v1523_v19  ;;  %2798 = vmatpush3.bf16.msra.mxu1 %v1567_v41 }
 0x3b3   : > { %v1589_v21 = vpop.permute.xlu0 %1588  ;;  %2746 = vmatpush3.bf16.msk.msra.mxu0 %vm4180_vm8, %v4009_v6  ;;  %v1561_v24 = vpop.permute.xlu1 %1560 }
 0x3b4   : > { %2747 = vmatprep.subr.bf16.mxu0 %v1521_v15  ;;  %2799 = vmatprep.subr.bf16.mxu1 %v1589_v21 }
 0x3b5   : > { %2800 = vmatpush3.bf16.msra.mxu1 %v1565_v58 }
 0x3b7   : > { %v1587_v55 = vpop.permute.xlu0 %1586  ;;  %2748 = vmatpush3.bf16.msk.msra.mxu0 %vm4180_vm8, %v3983_v16  ;;  %v1555_v35 = vpop.permute.xlu1 %1554  ;;  %v3052_v16 = vld [vmem:[%s4577_s7 + $0x54] ss:$20 sps:$4 sm:$0xff]  }
 0x3b8   : > { %2801 = vmatprep.subr.bf16.mxu1 %v1587_v55 }
 0x3b9   : > { %2802 = vmatpush3.bf16.msra.mxu1 %v1563_v46 }
 0x3ba   : > { %1866 = vmatmul.mubr.bf16.vlgmr.msra.gmra.mxu0 %v3046_v42 }
 0x3bb   : > { %v1585_v6 = vpop.permute.xlu0 %1584  ;;  %1873 = vmatprep.mubr.bf16.mxu0 %v3049_v12  ;;  %v1553_v60 = vpop.permute.xlu1 %1552 }
 0x3bc   : > { %2803 = vmatprep.subr.bf16.mxu1 %v1585_v6 }
 0x3bd   : > { %2804 = vmatpush3.bf16.msra.mxu1 %v1561_v24 }
 0x3bf   : > { %v1579_v10 = vpop.permute.xlu0 %1578  ;;  %v1551_v23 = vpop.permute.xlu1 %1550 }
 0x3c0   : > { %2805 = vmatprep.subr.bf16.mxu1 %v1579_v10 }
 0x3c1   : > { %2806 = vmatpush3.bf16.msra.mxu1 %v1555_v35 }
 0x3c2   : > { %1874 = vmatmul.mubr.bf16.gmra.mxu0 %v3051_v63 }
 0x3c3   : > { %v1577_v22 = vpop.permute.xlu0 %1576  ;;  %1881 = vmatprep.mubr.bf16.mxu0 %v3052_v16  ;;  %v1549_v54 = vpop.permute.xlu1 %1548 }
 0x3c4   : > { %2807 = vmatprep.subr.bf16.mxu1 %v1577_v22 }
 0x3c5   : > { %2808 = vmatpush3.bf16.msra.mxu1 %v1553_v60 }
 0x3c7   : > { %v1575_v33 = vpop.permute.xlu0 %1574  ;;  %v1601_v57 = vpop.permute.xlu1 %1600 }
 0x3c8   : > { %2809 = vmatprep.subr.bf16.mxu1 %v1575_v33 }
 0x3c9   : > { %2810 = vmatpush3.bf16.msra.mxu1 %v1551_v23 }
 0x3ca   : > { %1882 = vmatmul.mubr.bf16.gmra.mxu0 %v3054_v17 }
 0x3cb   : > { %v1573_v26 = vpop.permute.xlu0 %1572  ;;  %1889 = vmatprep.mubr.bf16.mxu0 %v3058_v40  ;;  %v1597_v47 = vpop.permute.xlu1 %1596 }
 0x3cc   : > { %2811 = vmatprep.subr.bf16.mxu1 %v1573_v26 }
 0x3cd   : > { %2812 = vmatpush3.bf16.msra.mxu1 %v1549_v54 }
 0x3ce   : > { %2914 = vmatprep.subr.mxu1 %v4589_v39 }
 0x3cf   : > { %v1603_v5 = vpop.permute.xlu0 %1602 }
 0x3d0   : > { %1963 = vmatmul.mubr.bf16.vlgmr.msra.gmra.mxu1 %v3055_v27  ;;  %2890 = vmatprep.subr.bf16.mxu0 %v1603_v5 }
 0x3d1   : > { %2891 = vmatpush3.bf16.msra.mxu0 %v1603_v5  ;;  %1970 = vmatprep.mubr.bf16.mxu1 %v3061_v45 }
 0x3d2   : > { %1890 = vmatmul.mubr.bf16.gmra.mxu0 %v3060_v28  ;;  %2892 = vmatprep.subr.bf16.mxu0 %v1601_v57 }
 0x3d3   : > { %1897 = vmatprep.mubr.bf16.mxu0 %v3064_v38  ;;  %v1599_v48 = vpop.permute.xlu0 %1598 }
 0x3d5   : > { %2893 = vmatpush3.bf16.msra.mxu0 %v1601_v57 }
 0x3d6   : > { %2894 = vmatprep.subr.bf16.mxu0 %v1599_v48 }
 0x3d8   : > { %1971 = vmatmul.mubr.bf16.gmra.mxu1 %v3063_v52 }
 0x3d9   : > { %2895 = vmatpush3.bf16.msra.mxu0 %v1599_v48  ;;  %1978 = vmatprep.mubr.bf16.mxu1 %v3067_v9 }
 0x3da   : > { %1898 = vmatmul.mubr.bf16.gmra.mxu0 %v3066_v37  ;;  %2896 = vmatprep.subr.bf16.mxu0 %v1597_v47 }
 0x3db   : > { %1905 = vmatprep.mubr.bf16.mxu0 %v3070_v8 }
 0x3dd   : > { %2897 = vmatpush3.bf16.msra.mxu0 %v1597_v47 }
 0x3e0   : > { %1979 = vmatmul.mubr.bf16.gmra.mxu1 %v3069_v59  ;;  %v4344_v48 = vpop.permute.xlu0 %2217  ;;  %v4350_v59 = vpop.permute.xlu1 %2212 }
 0x3e1   : > { %1986 = vmatprep.mubr.bf16.mxu1 %v3073_v30 }
 0x3e2   : > { %1906 = vmatmul.mubr.bf16.gmra.mxu0 %v3072_v20 }
 0x3e3   : > { %1913 = vmatprep.mubr.bf16.mxu0 %v3076_v50 }
 0x3e8   : > { %1987 = vmatmul.mubr.bf16.gmra.mxu1 %v3075_v14 }
 0x3e9   : > { %1994 = vmatprep.mubr.bf16.mxu1 %v3079_v36 }
 0x3ea   : > { %1914 = vmatmul.mubr.bf16.gmra.mxu0 %v3078_v49 }
 0x3eb   : > { %1921 = vmatprep.mubr.bf16.mxu0 %v3082_v2 }
 0x3f0   : > { %1995 = vmatmul.mubr.bf16.gmra.mxu1 %v3081_v56  ;;  %v4358_v56 = vpop.permute.xlu0 %2329 }
 0x3f1   : > { %2002 = vmatprep.mubr.bf16.mxu1 %v3085_v61 }
 0x3f2   : > { %1922 = vmatmul.mubr.bf16.gmra.mxu0 %v3084_v18 }
 0x3f3   : > { %2898 = vmatprep.mubr.msk.bf16.mxu0 %vm1808_vm9, %v3088_v62 }
 0x3f8   : > { %2003 = vmatmul.mubr.bf16.gmra.mxu1 %v3087_v3  ;;  %v4362_v3 = vpop.permute.xlu1 %2207 }
 0x3f9   : > { %2010 = vmatprep.mubr.bf16.mxu1 %v3090_v1 }
 0x3fa   : > { %2899 = vmatmul.mubr.msk.bf16.vlgmr.msra.gmra.mxu0 %vm1808_vm9, %v3089_v13 }
 0x3fb   : > { %2902 = vmatprep.mubr.msk.bf16.mxu0 %vm1808_vm9, %v3093_v7 }
 0x400   : > { %2011 = vmatmul.mubr.bf16.gmra.mxu1 %v3092_v43 }
 0x401   : > { %2018 = vmatprep.mubr.bf16.mxu1 %v3095_v29 }
 0x402   : > { %2903 = vmatmul.mubr.msk.bf16.gmra.mxu0 %vm1808_vm9, %v3094_v4 }
 0x403   : > { %2906 = vmatprep.mubr.msk.bf16.mxu0 %vm1808_vm9, %v3098_v34  ;;  %v4372_v34 = vpop.permute.xlu0 %2324 }
 0x408   : > { %2019 = vmatmul.mubr.bf16.gmra.mxu1 %v3097_v11 }
 0x409   : > { %2946 = vmatprep.mubr.msk.f32.mxu1 %vm3186_vm10, %v4589_v39 }
 0x40a   : > { %2907 = vmatmul.mubr.msk.bf16.gmra.mxu0 %vm1808_vm9, %v3099_v25 }
 0x40b   : > { %2910 = vmatprep.mubr.msk.bf16.mxu0 %vm1808_vm9, %v3100_v53 }
 0x412   : > { %2911 = vmatmul.mubr.msk.bf16.gmra.mxu0 %vm1808_vm9, %v3101_v51  ;;  %v4380_v51 = vpop.permute.xlu1 %2202 }
 0x47a   : > { %v2749_v44 = vpop.f32.mrf.mxu0 }
 0x47c   : > { %v2750_v15 = vpop.f32.mrf.mxu0 }
 0x47d   : > { %v2751_v19 = vadd.f32 %v2750_v15, %v2749_v44 }
 0x47e   : > { %v2752_v58 = vpop.f32.mrf.mxu0 }
 0x480   : > { %v2753_v41 = vpop.f32.mrf.mxu0 }
 0x481   : > { %v2754_v46 = vadd.f32 %v2753_v41, %v2752_v58  ;;  %v4388_v41 = vpop.permute.xlu0 %2319 }
 0x482   : > { %v2755_v21 = vpop.f32.mrf.mxu0 }
 0x484   : > { %v2756_v24 = vpop.f32.mrf.mxu0 }
 0x485   : > { %v2757_v42 = vadd.f32 %v2756_v24, %v2755_v21  ;;  %v4392_v24 = vpop.permute.xlu1 %2197 }
 0x486   : > { %v2758_v55 = vpop.f32.mrf.mxu0 }
 0x488   : > { %v2759_v12 = vpop.f32.mrf.mxu0 }
 0x489   : > { %v2760_v35 = vadd.f32 %v2759_v12, %v2758_v55 }
 0x48a   : > { %v2761_v6 = vpop.f32.mrf.mxu0 }
 0x48c   : > { %v2762_v63 = vpop.f32.mrf.mxu0 }
 0x48d   : > { %v2763_v60 = vadd.f32 %v2762_v63, %v2761_v6  ;;  %v4398_v6 = vpop.permute.xlu0 %2314 }
 0x48e   : > { %v2764_v10 = vpop.f32.mrf.mxu0  ;;  %4623 = vst [vmem:[#allocation17_spill] sm:$0xff] %v4398_v6 }
 0x490   : > { %v2765_v16 = vpop.f32.mrf.mxu0  ;;  %v2813_v22 = vpop.f32.mrf.mxu1 }
 0x491   : > { %v4338_v23 = vadd.f32 %v2765_v16, %v2764_v10  ;;  %v4402_v10 = vpop.permute.xlu1 %2192 }
 0x492   : > { %v2767_v17 = vpop.f32.mrf.mxu0  ;;  %v2814_v33 = vpop.f32.mrf.mxu1  ;;  %4624 = vst [vmem:[#allocation18_spill] sm:$0xff] %v4402_v10 }
 0x493   : > { %4615 = vst [vmem:[#allocation9_spill] sm:$0xff] %v4338_v23  ;;  %v2815_v40 = vadd.f32 %v2814_v33, %v2813_v22 }
 0x494   : > { %v2768_v54 = vpop.f32.mrf.mxu0  ;;  %v2816_v26 = vpop.f32.mrf.mxu1 }
 0x495   : > { %v4340_v27 = vadd.f32 %v2768_v54, %v2767_v17  ;;  %v4342_v45 = vadd.f32 %v2815_v40, %v2751_v19  ;;  %v4404_v40 = vpop.permute.xlu0 %2309 }
 0x496   : > { %v2770_v28 = vpop.f32.mrf.mxu0  ;;  %v2817_v5 = vpop.f32.mrf.mxu1  ;;  %4625 = vst [vmem:[#allocation19_spill] sm:$0xff] %v4404_v40 }
 0x497   : > { %4616 = vst [vmem:[#allocation10_spill] sm:$0xff] %v4340_v27  ;;  %4617 = vst [vmem:[#allocation11_spill] sm:$0xff] %v4342_v45  ;;  %v2818_v38 = vadd.f32 %v2817_v5, %v2816_v26 }
 0x498   : > { %v2771_v57 = vpop.f32.mrf.mxu0  ;;  %v2819_v52 = vpop.f32.mrf.mxu1 }
 0x499   : > { %v4346_v9 = vadd.f32 %v2771_v57, %v2770_v28  ;;  %v4348_v37 = vadd.f32 %v2818_v38, %v2754_v46  ;;  %v4406_v28 = vpop.permute.xlu1 %2187 }
 0x49a   : > { %v2773_v8 = vpop.f32.mrf.mxu0  ;;  %v2820_v47 = vpop.f32.mrf.mxu1  ;;  %4626 = vst [vmem:[#allocation20_spill] sm:$0xff] %v4406_v28 }
 0x49b   : > { %4618 = vst [vmem:[#allocation12_spill] sm:$0xff] %v4346_v9  ;;  %4619 = vst [vmem:[#allocation13_spill] sm:$0xff] %v4348_v37  ;;  %v2821_v30 = vadd.f32 %v2820_v47, %v2819_v52 }
 0x49c   : > { %v2774_v20 = vpop.f32.mrf.mxu0  ;;  %v2822_v50 = vpop.f32.mrf.mxu1 }
 0x49d   : > { %v4352_v14 = vadd.f32 %v2774_v20, %v2773_v8  ;;  %v4354_v36 = vadd.f32 %v2821_v30, %v2757_v42  ;;  %v4412_v8 = vpop.permute.xlu0 %2304  ;;  %v4416_v20 = vpop.permute.xlu1 %2182 }
 0x49e   : > { %v4356_v49 = vpop.f32.mrf.mxu0  ;;  %v2823_v2 = vpop.f32.mrf.mxu1  ;;  %4629 = vst [vmem:[#allocation23_spill] sm:$0xff] %v4412_v8  ;;  %4631 = vst [vmem:[#allocation25_spill] sm:$0xff] %v4416_v20 }
 0x49f   : > { %4620 = vst [vmem:[#allocation14_spill] sm:$0xff] %v4354_v36  ;;  %v2824_v61 = vadd.f32 %v2823_v2, %v2822_v50 }
 0x4a0   : > { %v4360_v18 = vpop.f32.mrf.mxu0  ;;  %v2825_v62 = vpop.f32.mrf.mxu1 }
 0x4a1   : > { %v4364_v1 = vadd.f32 %v2824_v61, %v2760_v35  ;;  %v4426_v39 = vpop.permute.xlu1 %2177 }
 0x4a2   : > { %v4366_v13 = vpop.f32.mrf.mxu0  ;;  %v2826_v7 = vpop.f32.mrf.mxu1  ;;  %4636 = vst [vmem:[#allocation30_spill] sm:$0xff] %v4426_v39 }
 0x4a3   : > { %4621 = vst [vmem:[#allocation15_spill] sm:$0xff] %v4364_v1  ;;  %v2827_v43 = vadd.f32 %v2826_v7, %v2825_v62  ;;  %v4422_v7 = vpop.permute.xlu0 %2299 }
 0x4a4   : > { %v4368_v29 = vpop.f32.mrf.mxu0  ;;  %v4370_v4 = vpop.f32.mrf.mxu1  ;;  %4634 = vst [vmem:[#allocation28_spill] sm:$0xff] %v4422_v7 }
 0x4a5   : > { %v4374_v11 = vadd.f32 %v2827_v43, %v2763_v60  ;;  %v4434_v36 = vpop.permute.xlu1 %2172 }
 0x4a6   : > { %v4376_v25 = vpop.f32.mrf.mxu0  ;;  %v4378_v53 = vpop.f32.mrf.mxu1  ;;  %4640 = vst [vmem:[#allocation34_spill] sm:$0xff] %v4434_v36 }
 0x4a7   : > { %4622 = vst [vmem:[#allocation16_spill] sm:$0xff] %v4374_v11  ;;  %v4432_v37 = vpop.permute.xlu0 %2294 }
 0x4a8   : > { %v4382_v44 = vpop.f32.mrf.mxu0  ;;  %v4384_v15 = vpop.f32.mrf.mxu1  ;;  %4639 = vst [vmem:[#allocation33_spill] sm:$0xff] %v4432_v37 }
 0x4a9   : > { %v4438_v40 = vpop.permute.xlu1 %2167 }
 0x4aa   : > { %v2785_v19 = vpop.f32.mrf.mxu0  ;;  %v4386_v58 = vpop.f32.mrf.mxu1 }
 0x4ab   : > { %v4436_v8 = vpop.permute.xlu0 %2289 }
 0x4ac   : > { %v2786_v46 = vpop.f32.mrf.mxu0  ;;  %v4390_v21 = vpop.f32.mrf.mxu1  ;;  %4641 = vst [vmem:[#allocation35_spill] sm:$0xff] %v4436_v8 }
 0x4ae   : > { %v2788_v42 = vpop.f32.mrf.mxu0  ;;  %v4394_v55 = vpop.f32.mrf.mxu1 }
 0x4af   : > { %v4442_v9 = vpop.permute.xlu0 %2284 }
 0x4b0   : > { %v2789_v12 = vpop.f32.mrf.mxu0  ;;  %v4396_v35 = vpop.f32.mrf.mxu1 }
 0x4b2   : > { %v2791_v63 = vpop.f32.mrf.mxu0  ;;  %v4400_v60 = vpop.f32.mrf.mxu1 }
 0x4b4   : > { %v2792_v16 = vpop.f32.mrf.mxu0  ;;  %v2840_v22 = vpop.f32.mrf.mxu1 }
 0x4b6   : > { %v2794_v17 = vpop.f32.mrf.mxu0  ;;  %v2841_v33 = vpop.f32.mrf.mxu1 }
 0x4b8   : > { %v2795_v54 = vpop.f32.mrf.mxu0  ;;  %v2843_v26 = vpop.f32.mrf.mxu1 }
 0x4b9   : > { %v2796_v27 = vadd.f32 %v2795_v54, %v2794_v17  ;;  %v4447_v17 = vpop.permute.xlu1 %2162 }
 0x4ba   : > { %v2844_v5 = vpop.f32.mrf.mxu1  ;;  %v4408_v38 = vpop.f32.mrf.mxu0 }
 0x4bb   : > { %4627 = vst [vmem:[#allocation21_spill] sm:$0xff] %v4408_v38 }
 0x4bc   : > { %v2846_v57 = vpop.f32.mrf.mxu1  ;;  %v4410_v52 = vpop.f32.mrf.mxu0 }
 0x4bd   : > { %4628 = vst [vmem:[#allocation22_spill] sm:$0xff] %v4410_v52 }
 0x4be   : > { %v2847_v47 = vpop.f32.mrf.mxu1  ;;  %v4414_v30 = vpop.f32.mrf.mxu0 }
 0x4bf   : > { %4630 = vst [vmem:[#allocation24_spill] sm:$0xff] %v4414_v30 }
 0x4c0   : > { %v2849_v50 = vpop.f32.mrf.mxu1  ;;  %v4418_v2 = vpop.f32.mrf.mxu0 }
 0x4c1   : > { %4632 = vst [vmem:[#allocation26_spill] sm:$0xff] %v4418_v2 }
 0x4c2   : > { %v2850_v61 = vpop.f32.mrf.mxu1  ;;  %v4420_v62 = vpop.f32.mrf.mxu0 }
 0x4c3   : > { %4633 = vst [vmem:[#allocation27_spill] sm:$0xff] %v4420_v62  ;;  %v2851_v62 = vadd.f32 %v2850_v61, %v2849_v50  ;;  %v4650_v50 = vld [vmem:[#allocation9_spill] sm:$0xff] }
 0x4c4   : > { %v2852_v43 = vpop.f32.mrf.mxu1  ;;  %v4424_v32 = vpop.f32.mrf.mxu0 }
 0x4c5   : > { %4635 = vst [vmem:[#allocation29_spill] sm:$0xff] %v4424_v32  ;;  %v2793_v32 = vadd.f32 %v2792_v16, %v2791_v63  ;;  %v2790_v63 = vadd.f32 %v2789_v12, %v2788_v42 }
 0x4c6   : > { %v2853_v0 = vpop.f32.mrf.mxu1  ;;  %v4428_v31 = vpop.f32.mrf.mxu0 }
 0x4c7   : > { %4637 = vst [vmem:[#allocation31_spill] sm:$0xff] %v4428_v31  ;;  %v2787_v31 = vadd.f32 %v2786_v46, %v2785_v19  ;;  %v2854_v6 = vadd.f32 %v2853_v0, %v2852_v43  ;;  %v4653_v43 = vld [vmem:[#allocation25_spill] sm:$0xff] }
 0x4c8   : > { %v2855_v52 = vpop.f32.mrf.mxu1  ;;  %v4430_v45 = vpop.f32.mrf.mxu0 }
 0x4c9   : > { %4638 = vst [vmem:[#allocation32_spill] sm:$0xff] %v4430_v45  ;;  %v2848_v45 = vadd.f32 %v2847_v47, %v2846_v57  ;;  %v2013_v16 = vadd.f32 %v2851_v62, %v2787_v31  ;;  %v2016_v46 = vadd.f32 %v2854_v6, %v2790_v63  ;;  %v2839_v31 = vadd.f32 %v4400_v60, %v4396_v35  ;;  %v2280_v35 = vpop.permute.xlu0 %2279  ;;  %v4652_v62 = vld [vmem:[#allocation23_spill] sm:$0xff] }
 0x4ca   : > { %v2856_v38 = vpop.f32.mrf.mxu1  ;;  %v2908_v2 = vpop.f32.mrf.mxu0  ;;  %v2833_v6 = vadd.f32 %v4386_v58, %v4384_v15 }
 0x4cb   : > { %v2857_v11 = vadd.f32 %v2856_v38, %v2855_v52  ;;  %v2784_v38 = vadd.f32 %v4382_v44, %v4376_v25  ;;  %v2845_v52 = vadd.f32 %v2844_v5, %v2843_v26  ;;  %v2778_v25 = vadd.f32 %v4360_v18, %v4356_v49 }
 0x4cc   : > { %v2858_v30 = vpop.f32.mrf.mxu1  ;;  %v2093_v1 = vpop.f32.mrf.mxu0 }
 0x4cd   : > { %v2021_v28 = vadd.f32 %v2857_v11, %v2793_v32  ;;  %v2781_v32 = vadd.f32 %v4368_v29, %v4366_v13  ;;  %v2842_v11 = vadd.f32 %v2841_v33, %v2840_v22  ;;  %v2008_v57 = vadd.f32 %v2848_v45, %v2784_v38  ;;  %v2158_v22 = vpop.permute.xlu1 %2157  ;;  %v4643_v33 = vld [vmem:[#allocation18_spill] sm:$0xff] }
 0x4ce   : > { %v2859_v7 = vpop.f32.mrf.mxu1  ;;  %v2909_v20 = vpop.f32.mrf.mxu0 }
 0x4cf   : > { %v2860_v23 = vadd.f32 %v2859_v7, %v2858_v30  ;;  %v2105_v44 = vadd.f32 %v2909_v20, %v2008_v57  ;;  %v2000_v29 = vadd.f32 %v2842_v11, %v2778_v25  ;;  %v4649_v30 = vld [vmem:[#allocation20_spill] sm:$0xff] }
 0x4d0   : > { %v2096_v39 = vpop.f32.mrf.mxu0  ;;  %v4655_v11 = vld [vmem:[#allocation32_spill] sm:$0xff] }
 0x4d1   : > { %v2024_v8 = vadd.f32 %v2860_v23, %v2796_v27  ;;  %v2005_v23 = vadd.f32 %v2845_v52, %v2781_v32  ;;  %v2231_v60 = vmul.f32 %v4392_v24, %v2105_v44  ;;  %v4646_v24 = vmov 0.0   ;;  %v2153_v63 = vpop.permute.xlu1 %2152  ;;  %v4658_v25 = vld [vmem:[#allocation16_spill] sm:$0xff]  ;;  %v4660_v44 = vld [vmem:[#allocation33_spill] sm:$0xff] }
 0x4d2   : > { %v2912_v37 = vpop.f32.mrf.mxu0 }
 0x4d3   : > { %v2118_v36 = vadd.f32 %v2912_v37, %v2021_v28  ;;  %v4644_v28 = vld [vmem:[#allocation17_spill] sm:$0xff] }
 0x4d4   : > { %v2109_v10 = vpop.f32.mrf.mxu0 }
 0x4d5   : > { %v2234_v19 = vmul.f32 %v4350_v59, %v2118_v36  ;;  %v2110_v0 = vadd.f32 %v2109_v10, %v2013_v16  ;;  %v2836_v59 = vadd.f32 %v4394_v55, %v4390_v21  ;;  %v2102_v36 = vadd.f32 %v2908_v2, %v2005_v23  ;;  %v4654_v16 = vld [vmem:[#allocation30_spill] sm:$0xff] }
 0x4d6   : > { %v2913_v47 = vpop.f32.mrf.mxu0  ;;  %v2097_v10 = vadd.f32 %v2096_v39, %v2000_v29  ;;  %v4647_v39 = vld [vmem:[#allocation31_spill] sm:$0xff] }
 0x4d7   : > { %v2121_v37 = vadd.f32 %v2913_v47, %v2024_v8  ;;  %v2346_v42 = vadd.f32 %v4372_v34, %v2234_v19  ;;  %v2232_v12 = vmul.f32 %v4380_v51, %v2110_v0  ;;  %v2830_v34 = vadd.f32 %v4378_v53, %v4370_v4  ;;  %v4642_v51 = vld [vmem:[#allocation12_spill] sm:$0xff]  ;;  %v2275_v53 = vpop.permute.xlu0 %2274 }
 0x4d8   : > { %v2112_v27 = vpop.f32.mrf.mxu0  ;;  %v2229_v20 = vmul.f32 %v4649_v30, %v2097_v10  ;;  %v4656_v19 = vld [vmem:[#allocation28_spill] sm:$0xff] }
 0x4d9   : > { %v2235_v13 = vmul.f32 %v4344_v48, %v2121_v37  ;;  %v2113_v45 = vadd.f32 %v2112_v27, %v2016_v46  ;;  %v1997_v48 = vadd.f32 %v2839_v31, %v4352_v14  ;;  %v2362_v26 = vmax.f32 %v2346_v42, 0.0  ;;  %v4645_v14 = vld [vmem:[#allocation10_spill] sm:$0xff]  ;;  %v4659_v31 = vld [vmem:[#allocation29_spill] sm:$0xff]  ;;  %v4663_v42 = vld [vmem:[#allocation35_spill] sm:$0xff] }
 0x4da   : > { %v2344_v15 = vadd.f32 %v4644_v28, %v2232_v12  ;;  %v1989_v58 = vadd.f32 %v2833_v6, %v4645_v14  ;;  %v1984_v2 = vadd.f32 %v2830_v34, %v4650_v50  ;;  %v2341_v0 = vadd.f32 %v4656_v19, %v2229_v20  ;;  %v4657_v37 = vld [vmem:[#allocation34_spill] sm:$0xff]  ;;  %v2148_v6 = vpop.permute.xlu1 %2147 }
 0x4db   : > { %v2347_v49 = vadd.f32 %v4358_v56, %v2235_v13  ;;  %v2233_v18 = vmul.f32 %v4362_v3, %v2113_v45  ;;  %v1992_v56 = vadd.f32 %v2836_v59, %v4642_v51  ;;  %v2230_v3 = vmul.f32 %v4643_v33, %v2102_v36  ;;  %v2270_v45 = vpop.permute.xlu0 %2269  ;;  %v4661_v59 = vld [vmem:[#allocation15_spill] sm:$0xff]  ;;  %v4662_v36 = vld [vmem:[#allocation24_spill] sm:$0xff]  ;;  %v4667_v33 = vld [vmem:[#allocation26_spill] sm:$0xff] }
 0x4dc   : > { %v2094_v54 = vadd.f32 %v2093_v1, %v1997_v48  ;;  %v4651_v1 = vld [vmem:[#allocation27_spill] sm:$0xff]  ;;  %v2360_v52 = vmax.f32 %v2344_v15, 0.0  ;;  %v2081_v57 = vadd.f32 %v4655_v11, %v1984_v2  ;;  %v2078_v23 = vadd.f32 %v4659_v31, %v4658_v25  ;;  %v4664_v48 = vld [vmem:[#allocation14_spill] sm:$0xff] }
 0x4dd   : > { %v2363_v21 = vmax.f32 %v2347_v49, 0.0  ;;  %v2345_v55 = vadd.f32 %v4388_v41, %v2233_v18  ;;  %v2089_v5 = vadd.f32 %v4647_v39, %v1992_v56  ;;  %v4648_v41 = vld [vmem:[#allocation19_spill] sm:$0xff]  ;;  %v2086_v61 = vadd.f32 %v4651_v1, %v1989_v58  ;;  %v4666_v56 = vld [vmem:[#allocation13_spill] sm:$0xff]  ;;  %v4669_v14 = vld [vmem:[#allocation22_spill] sm:$0xff] }
 0x4de   : > { %v2343_v8 = vadd.f32 %v4648_v41, %v2231_v60  ;;  %v2342_v7 = vadd.f32 %v4652_v62, %v2230_v3  ;;  %v2228_v38 = vmul.f32 %v4653_v43, %v2094_v54  ;;  %v2073_v29 = vadd.f32 %v4662_v36, %v4661_v59  ;;  %v4665_v60 = vld [vmem:[#allocation21_spill] sm:$0xff]  ;;  %v4668_v15 = vld [vmem:[#allocation11_spill] sm:$0xff]  ;;  %v2143_v39 = vpop.permute.xlu1 %2142 }
 0x4df   : > { %2915 = vmatpush3.msra.mxu1 %v2363_v21  ;;  %v2361_v4 = vmax.f32 %v2345_v55, 0.0  ;;  %v2227_v32 = vmul.f32 %v4654_v16, %v2089_v5  ;;  %v2226_v46 = vmul.f32 %v4657_v37, %v2086_v61  ;;  %v2225_v49 = vmul.f32 %v4438_v40, %v2081_v57  ;;  %v4672_v57 = vld [vmem:[#allocation8_spill] sm:$0xff] }
 0x4e0   : > { %2916 = vmatprep.subr.mxu1 %v4646_v24  ;;  %v2359_v47 = vmax.f32 %v2343_v8, 0.0  ;;  %v2358_v27 = vmax.f32 %v2342_v7, 0.0  ;;  %v2340_v13 = vadd.f32 %v4660_v44, %v2228_v38  ;;  %v2357_v18 = vmax.f32 %v2341_v0, 0.0  ;;  %v2364_v7 = vld [vmem:[%s4580_s10] sm:$0x1]  ;;  %v4670_v38 = vld [vmem:[#allocation7_spill] sm:$0xff] }
 0x4e1   : > { %2917 = vmatpush3.msra.mxu1 %v2362_v26  ;;  %v2339_v12 = vadd.f32 %v4663_v42, %v2227_v32  ;;  %v2070_v10 = vadd.f32 %v4665_v60, %v4664_v48  ;;  %v2338_v21 = vadd.f32 %v4442_v9, %v2226_v46  ;;  %v2224_v55 = vmul.f32 %v4447_v17, %v2078_v23  ;;  %v2265_v26 = vpop.permute.xlu0 %2264 }
 0x4e2   : > { %2918 = vmatprep.subr.mxu1 %v4646_v24  ;;  %v2356_v34 = vmax.f32 %v2340_v13, 0.0  ;;  %v2223_v51 = vmul.f32 %v2158_v22, %v2073_v29  ;;  %v2065_v40 = vadd.f32 %v4667_v33, %v4666_v56  ;;  %v2337_v54 = vadd.f32 %v2280_v35, %v2225_v49 }
 0x4e3   : > { %2919 = vmatpush3.msra.mxu1 %v2361_v4  ;;  %v2355_v3 = vmax.f32 %v2339_v12, 0.0  ;;  %v2222_v28 = vmul.f32 %v2153_v63, %v2070_v10  ;;  %v2062_v9 = vadd.f32 %v4669_v14, %v4668_v15  ;;  %v2354_v58 = vmax.f32 %v2338_v21, 0.0 }
 0x4e4   : > { %2920 = vmatprep.subr.mxu1 %v4646_v24  ;;  %v2336_v17 = vadd.f32 %v2275_v53, %v2224_v55  ;;  %v2335_v22 = vadd.f32 %v2270_v45, %v2223_v51  ;;  %v2221_v5 = vmul.f32 %v2148_v6, %v2065_v40  ;;  %v2353_v41 = vmax.f32 %v2337_v54, 0.0  ;;  %v2255_v53 = vpop.permute.xlu1 %2254 }
 0x4e5   : > { %2921 = vmatpush3.msra.mxu1 %v2360_v52  ;;  %v2334_v35 = vadd.f32 %v2265_v26, %v2222_v28  ;;  %v2220_v8 = vmul.f32 %v2143_v39, %v2062_v9  ;;  %v2260_v20 = vpop.permute.xlu0 %2259  ;;  %v4671_v52 = vsub.s32 0, %v4670_v38  ;;  %v2728_v36 = vadd.s32 4294967295, %v4672_v57 }
 0x4e6   : > { %2922 = vmatprep.subr.mxu1 %v4646_v24  ;;  %v2352_v30 = vmax.f32 %v2336_v17, 0.0  ;;  %v2351_v4 = vmax.f32 %v2335_v22, 0.0  ;;  %v2333_v50 = vadd.f32 %v2260_v20, %v2221_v5 }
 0x4e7   : > { %2923 = vmatpush3.msra.mxu1 %v2359_v47  ;;  %v2350_v2 = vmax.f32 %v2334_v35, 0.0  ;;  %v2332_v1 = vadd.f32 %v2255_v53, %v2220_v8  ;;  %v2454_v47 = vadd.s32 1, %v4672_v57  ;;  %vm2448_vm12 = vcmp.ge.s32.totalorder %v2728_v36, 0 }
 0x4e8   : > { %2924 = vmatprep.subr.mxu1 %v4646_v24  ;;  %v2349_v61 = vmax.f32 %v2333_v50, 0.0 }
 0x4e9   : > { %2925 = vmatpush3.msra.mxu1 %v2358_v27  ;;  %v2348_v62 = vmax.f32 %v2332_v1, 0.0  ;;  %v2369_v43 = vpop.permute.xlu0 %2368  ;;  %vm2455_vm11 = vcmp.le.s32.totalorder %v2454_v47, 3 }
 0x4ea   : > { %2926 = vmatprep.subr.mxu1 %v4646_v24  ;;  %v2374_v63 = vrot.slane %v2369_v43, %v4671_v52 }
 0x4eb   : > { %2927 = vmatpush3.msra.mxu1 %v2357_v18 }
 0x4ec   : > { %2928 = vmatprep.subr.mxu1 %v4646_v24 }
 0x4ed   : > { %2929 = vmatpush3.msra.mxu1 %v2356_v34 }
 0x4ee   : > { %2930 = vmatprep.subr.mxu1 %v4646_v24 }
 0x4ef   : > { %2931 = vmatpush3.msra.mxu1 %v2355_v3 }
 0x4f0   : > { %2932 = vmatprep.subr.mxu1 %v4646_v24 }
 0x4f1   : > { %2933 = vmatpush3.msra.mxu1 %v2354_v58 }
 0x4f2   : > { %2934 = vmatprep.subr.mxu1 %v4646_v24 }
 0x4f3   : > { %2935 = vmatpush3.msra.mxu1 %v2353_v41 }
 0x4f4   : > { %2936 = vmatprep.subr.mxu1 %v4646_v24 }
 0x4f5   : > { %2937 = vmatpush3.msra.mxu1 %v2352_v30 }
 0x4f6   : > { %2938 = vmatprep.subr.mxu1 %v4646_v24 }
 0x4f7   : > { %2939 = vmatpush3.msra.mxu1 %v2351_v4 }
 0x4f8   : > { %2940 = vmatprep.subr.mxu1 %v4646_v24 }
 0x4f9   : > { %2941 = vmatpush3.msra.mxu1 %v2350_v2 }
 0x4fa   : > { %2942 = vmatprep.subr.mxu1 %v4646_v24 }
 0x4fb   : > { %2943 = vmatpush3.msra.mxu1 %v2349_v61 }
 0x4fc   : > { %2944 = vmatprep.subr.mxu1 %v4646_v24 }
 0x4fd   : > { %2945 = vmatpush3.msra.mxu1 %v2348_v62 }
 0x4fe   : > { %2947 = vmatmul.mubr.f32.vlgmr.msra.gmra.mxu1 %v2364_v7 }
 0x5be   : > { %v2441_v16 = vpop.f32.mrf.mxu1 }
 0x5bf   : > { %v2442_v32 = vadd.f32 %v2441_v16, %v2374_v63 }
 0x5c0   : > { %v2948_v11 = vpop.f32.mrf.mxu1 }
 0x5c1   : > { %2456 = vrot.lane.b32.xlu0 %v2442_v32, %s4612_s29  ;;  %2450 = vrot.lane.b32.xlu1 %v2442_v32, %s4611_s22  ;;  %v2468_v25 = vmul.f32 0.875, %v2442_v32  ;;  %v2461_v31 = vmul.f32 0.625, %v2442_v32  ;;  %s426_s29 = sand.u32 1, %s3162_s24  }
 0x5c2   : > { %s2598_s19 = sshll.u32 %s426_s29, 2  ;;  %s2508_s1 = scalar_lea.sflag [#allocation4], %s426_s29 }
 0x5c3   : > { %s428_s20 = scalar_lea.vmem [#allocation3], %s2598_s19 }
 0x5c4   : > { %s2522_s21 = sshll.u32 %s428_s20, 4  ;;  %s2523_s21 = int_to_ptr.vmem [resolvable:$true] %s2522_s21 }
 0x5c5   : > { %s3102_s13 = scalar_lea.vmem %s2523_s21, 64  ;;  %p3109_p1 = scmp.lt.s32.totalorder %s2523_s21, %s3107_s11 }
 0x5c6   : > { %p3103_p12 = scmp.ne.s32.totalorder %s2523_s21, %s3102_s13  ;;  %p3110_p2 = scmp.lt.s32.totalorder %s3108_s2, %s3102_s13 }
 0x5c8   : > { %p3104_p13 = pnand %p3103_p12, %p3297_p4  ;;  %p3111_p3 = por %p3110_p2, %p3109_p1 }
 0x5ca   : > { %p3105_p0 = pneg %p3104_p13 }
 0x5cc   : > { %p3112_p5 = pnand %p3111_p3, %p3105_p0 }
 0x633   : > { %v2457_v19 = vpop.permute.xlu0 %2456  ;;  %v2451_v0 = vpop.permute.xlu1 %2450 }
 0x634   : > { %v2459_v37 = vsel %vm2455_vm11, %v2457_v19, %v2451_v0  ;;  %v2453_v29 = vsel %vm2448_vm12, %v2442_v32, %v2451_v0 }
 0x635   : > { %v2474_v24 = vmul.f32 0.125, %v2459_v37  ;;  %v2480_v46 = vmul.f32 0.375, %v2459_v37  ;;  %v2467_v12 = vmul.f32 0.125, %v2453_v29  ;;  %v2460_v48 = vmul.f32 0.375, %v2453_v29 }
 0x637   : > { %2482 = vrot.lane.b32.xlu0 %v2480_v46, %s3187_s18  ;;  %2476 = vrot.lane.b32.xlu1 %v2474_v24, %s3187_s18 }
 0x63b   : > { %2470 = vrot.lane.b32.xlu1 %v2468_v25, %s4611_s22  ;;  %2463 = vrot.lane.b32.xlu0 %v2461_v31, %s4611_s22 }
 0x6a9   : > { %v2483_v23 = vpop.permute.xlu0 %2482  ;;  %v2477_v27 = vpop.permute.xlu1 %2476 }
 0x6aa   : > { %v2485_v44 = vadd.f32 %v2483_v23, %v2461_v31  ;;  %v2479_v13 = vadd.f32 %v2477_v27, %v2468_v25 }
 0x6ac   : > { %v2495_v45 = vrot.slane %v2485_v44, 5  ;;  %v2490_v59 = vrot.slane %v2479_v13, 6 }
 0x6ad   : > { %v2471_v42 = vpop.permute.xlu1 %2470  ;;  %v2464_v18 = vpop.permute.xlu0 %2463 }
 0x6ae   : > { %2491 = vrot.lane.b32.xlu1 %v2490_v59, %s4611_s22  ;;  %2496 = vrot.lane.b32.xlu0 %v2495_v45, %s4611_s22  ;;  %v2473_v49 = vadd.f32 %v2471_v42, %v2467_v12  ;;  %v2466_v60 = vadd.f32 %v2464_v18, %v2460_v48 }
 0x6b0   : > { %v2487_v6 = vrot.slane %v2473_v49, 7 }
 0x6b2   : > { %v2500_v21 = vsel %vm2499_vm13, %v2466_v60, %v2487_v6 }
 0x720   : > { %v2492_v10 = vpop.permute.xlu1 %2491  ;;  %v2497_v55 = vpop.permute.xlu0 %2496 }
 0x721   : > { %v2502_v34 = vsel %vm2501_vm14, %v2500_v21, %v2492_v10 }
 0x722   : > { %v2504_v51 = vsel %vm2503_vm15, %v2502_v34, %v2497_v55 }
 0x723   : > { %2506 = vst.msk [vmem:[%s428_s20] sm:$0xf] %vm2505_vm0, %v2504_v51 }
 0x724   : > { %3115 = shalt.err (!%p3112_p5)
}
 0x725   : > { %s3116_s18 = scalar_lea.hbm %s4530_s0, 64  ;;  %s3120_s15 = scalar_lea.hbm %s4582_s12, 128 }
 0x726   : > { %p3117_p6 = scmp.ne.s32.totalorder %s4530_s0, %s3116_s18  ;;  %p3121_p10 = scmp.lt.s32.totalorder %s4530_s0, %s4582_s12 }
 0x727   : > { %p3122_p11 = scmp.lt.s32.totalorder %s3120_s15, %s3116_s18 }
 0x728   : > { %p3118_p7 = pnand %p3117_p6, %p3297_p4 }
 0x729   : > { %p3123_p12 = por %p3122_p11, %p3121_p10 }
 0x72a   : > { %p3119_p9 = pneg %p3118_p7 }
 0x72c   : > { %p3124_p13 = pnand %p3123_p12, %p3119_p9 }
 0x72e   : > { %3127 = shalt.err (!%p3124_p13)
}
 0x72f   : > { %2949 = dma.vmem_to_hbm [thread:$0]  (%p3297_p4), %s2523_s21, 64, %s4530_s0, %s2508_s1  }
 0x730 PF: > { %p2955_p0 = scmp.ge.s32.totalorder %s3178_s28, 2  ;;  %s2534_s30 = sand.u32 1, %s3158_s23  }
 0x731   : > { %s2535_s13 = scalar_lea.sflag [#allocation4], %s2534_s30 }
 0x732   : > { %p2952_p1 = pnand %p2955_p0, %p3304_p8 }
 0x734   : > { %p2953_p2 = pneg %p2952_p1 }
 0x736   : > { %3153 = dma.done.wait (%p2953_p2), %s2535_s13, 64  }
 0x737   : > { %3155 = vsyncadd (%p2953_p2), %s2535_s13, 4294967232  ;;  %s27_s28 = sadd.s32 1, %s3178_s28   ;;  %s4673_s14 = sld [smem:[#allocation6_spill]] }
 0x738   : > { %p24_p3 = scmp.ge.s32.totalorder %s27_s28, 4   ;;  %s4674_s23 = smov %s3162_s24 }
 0x739   : > { %s4675_s24 = smov %s3166_s25  ;;  %s4676_s25 = smov %s3310_s17 }
 0x73a   : > { %s4677_s26 = smov %s3174_s27  ;;  %26 = sbr.rel (!%p24_p3) target bundleno = 8 (0x8), region = 107 }
 0x73d   : > { %s4678_s27 = smov %s4673_s14 }
 0x73f   :  { %2540 = vsyncpa [#allocation4], 1 }
 0x740   :  { %2542 = vsyncpa [#allocation4 + $0x1], 1 }

</bundles_post_ra>
